<compile_context>
chip_gen: v7x
topology: tpu7x:2x2x1
jax: 0.10.0
libtpu: 0.0.40
codegen_flags: <defaults>
</compile_context>

<pallas_src>
import functools
import math

import jax
import jax.numpy as jnp
from jax import lax
from jax.experimental import pallas as pl
from jax.experimental.pallas import tpu as pltpu
from jax.scipy.linalg import block_diag

_INV_SQRT2 = 1.0 / math.sqrt(2.0)
_EXP_FLOOR = -80.0   # exp(-80) ~ 1.8e-35: safely above f32 underflow (~e^-87)


def _layer_norm(v, gamma, beta, eps):
    mu = jnp.mean(v, axis=-1, keepdims=True)
    var = jnp.mean(jnp.square(v - mu), axis=-1, keepdims=True)
    return (v - mu) * lax.rsqrt(var + eps) * gamma + beta


def _lgqa_kernel(x_ref, wq_ref, bq_ref, kblk_ref, vblk_ref, dmap_ref,
                 g1_ref, be1_ref, w1_ref, b1_ref, w2_ref, b2_ref,
                 g2_ref, be2_ref, o_ref,
                 *, tb, seq, hidden, scale, eps, compute_dtype):
    """One grid step = `tb` batch elements, folded into (tb*seq, H) MXU rows."""
    cd = compute_dtype
    x = x_ref[...].reshape(tb * seq, hidden)                  # (R, H), R = tb*seq

    # ---- q projection: one row-dense MXU matmul over all folded rows ----
    q = jnp.dot(x.astype(cd), wq_ref[...],
                preferred_element_type=jnp.float32) + bq_ref[...]

    # ---- latent attention: all heads fused via block-diagonal K^T / V ----
    s = jnp.dot(q.astype(cd), kblk_ref[...],
                preferred_element_type=jnp.float32) * scale   # (R, NH*L)
    # Global row max is a valid softmax shift (ratio unnorm/denom is invariant);
    # clamp at _EXP_FLOOR so no per-head denominator can underflow to zero.
    s = jnp.maximum(s - jnp.max(s, axis=-1, keepdims=True), _EXP_FLOOR)
    p = jnp.exp(s).astype(cd)
    unnorm = jnp.dot(p, vblk_ref[...],
                     preferred_element_type=jnp.float32)      # (R, H)
    denom = jnp.dot(p, dmap_ref[...],
                    preferred_element_type=jnp.float32)       # per-head sums, bcast over D lanes
    attn = unnorm * pl.reciprocal(denom, approx=True)

    # ---- residual + LayerNorm ----
    y = _layer_norm(attn + x, g1_ref[...], be1_ref[...], eps)

    # ---- MLP (Linear -> exact GELU -> Linear) with residual ----
    h1 = jnp.dot(y.astype(cd), w1_ref[...],
                 preferred_element_type=jnp.float32) + b1_ref[...]
    h1 = 0.5 * h1 * (1.0 + lax.erf(h1 * _INV_SQRT2))          # exact GELU (EUP erf)
    h2 = jnp.dot(h1.astype(cd), w2_ref[...],
                 preferred_element_type=jnp.float32) + b2_ref[...]
    z = y + h2

    # ---- final LayerNorm ----
    z = _layer_norm(z, g2_ref[...], be2_ref[...], eps)

    # ---- mean-pool over the sequence, per batch element ----
    o_ref[0] = jnp.mean(z.reshape(tb, seq, hidden), axis=1)   # (tb, H)


def _pick_batch_tile(B, S, row_target=128):
    """Largest divisor TB of B with TB*S <= row_target, keeping >=2 grid steps
    when B >= 2 (so both v7x TensorCores get work)."""
    best = 1
    for tb in range(1, B + 1):
        if B % tb != 0:
            continue
        if B >= 2 and B // tb < 2:
            continue
        if tb * S <= max(row_target, S):
            best = tb
    return best


def latent_gqa_forward(x, params, *, num_heads, eps=1e-5,
                       compute_dtype=jnp.float32):
    B, S, H = x.shape
    D = H // num_heads
    NHL = params["kblk"].shape[1]          # num_heads * num_latents
    Mh = params["w1t"].shape[1]

    TB = _pick_batch_tile(B, S)
    n_steps = B // TB

    # Cast only the large matmul operands; biases / norm params stay f32.
    wqt = params["wqt"].astype(compute_dtype)
    kblk = params["kblk"].astype(compute_dtype)
    vblk = params["vblk"].astype(compute_dtype)
    dmap = params["dmap"].astype(compute_dtype)
    w1t = params["w1t"].astype(compute_dtype)
    w2t = params["w2t"].astype(compute_dtype)

    kernel = functools.partial(
        _lgqa_kernel, tb=TB, seq=S, hidden=H,
        scale=D ** -0.5, eps=eps, compute_dtype=compute_dtype)

    def rep(shape):
        # Constant block index -> Pallas DMAs this operand only once.
        return pl.BlockSpec(shape, lambda b: (0, 0))

    in_specs = [
        pl.BlockSpec((TB, S, H), lambda b: (b, 0, 0)),  # x (batch-folded tile)
        rep((H, H)),                                    # Wq^T
        rep((1, H)),                                    # bq
        rep((H, NHL)),                                  # block-diag K^T
        rep((NHL, H)),                                  # block-diag V
        rep((NHL, H)),                                  # softmax-denominator map
        rep((1, H)), rep((1, H)),                       # LN1 gamma / beta
        rep((H, Mh)), rep((1, Mh)),                     # W1^T, b1
        rep((Mh, H)), rep((1, H)),                      # W2^T, b2
        rep((1, H)), rep((1, H)),                       # LN2 gamma / beta
    ]

    out = pl.pallas_call(
        kernel,
        out_shape=jax.ShapeDtypeStruct((n_steps, TB, H), jnp.float32),
        grid_spec=pltpu.PrefetchScalarGridSpec(
            num_scalar_prefetch=0,
            grid=(n_steps,),
            in_specs=in_specs,
            out_specs=pl.BlockSpec((1, TB, H), lambda b: (b, 0, 0)),
        ),
        compiler_params=pltpu.CompilerParams(
            dimension_semantics=("parallel",),
            vmem_limit_bytes=64 * 1024 * 1024,
        ),
    )(x, wqt, params["bq"], kblk, vblk, dmap,
      params["g1"], params["be1"], w1t, params["b1"],
      w2t, params["b2"], params["g2"], params["be2"])
    return out.reshape(B, H)


def pack_params(torch_params, *, num_heads):
    """Host-side (one-time) re-layout of the PyTorch parameters for the kernel."""
    wq = torch_params["wq"]
    H = wq.shape[0]
    D = H // num_heads
    lat = torch_params["latent_array"]                           # (L, H)
    L = lat.shape[0]
    lat_h = lat.reshape(L, num_heads, D).transpose(1, 0, 2)      # (NH, L, D)

    kblk = block_diag(*[lat_h[h].T for h in range(num_heads)])   # (H, NH*L)
    vblk = block_diag(*[lat_h[h] for h in range(num_heads)])     # (NH*L, H)
    dmap = block_diag(*([jnp.ones((L, D), jnp.float32)] * num_heads))

    Mh = torch_params["w1"].shape[0]
    return {
        "wqt": wq.T,                                             # (H, H)
        "bq": torch_params["bq"].reshape(1, H),
        "kblk": kblk.astype(jnp.float32),
        "vblk": vblk.astype(jnp.float32),
        "dmap": dmap.astype(jnp.float32),
        "g1": torch_params["g1"].reshape(1, H),
        "be1": torch_params["be1"].reshape(1, H),
        "w1t": torch_params["w1"].T,                             # (H, Mh)
        "b1": torch_params["b1"].reshape(1, Mh),
        "w2t": torch_params["w2"].T,                             # (Mh, H)
        "b2": torch_params["b2"].reshape(1, H),
        "g2": torch_params["g2"].reshape(1, H),
        "be2": torch_params["be2"].reshape(1, H),
    }


def _reference(x, torch_params, *, num_heads, eps=1e-5):
    """Pure-JAX re-implementation of the PyTorch forward (eval mode)."""
    B, S, H = x.shape
    D = H // num_heads
    wq, bq = torch_params["wq"], torch_params["bq"]
    lat_arr = torch_params["latent_array"]                       # (L, H)
    L = lat_arr.shape[0]

    q = x @ wq.T + bq
    q = q.reshape(B, S, num_heads, D).transpose(0, 2, 1, 3)      # (B, Hq, S, D)
    lat = lat_arr.reshape(L, num_heads, D).transpose(1, 0, 2)    # (Hq, L, D)
    scores = jnp.einsum("bhsd,hld->bhsl", q, lat) * (D ** -0.5)
    attn = jax.nn.softmax(scores, axis=-1)
    out = jnp.einsum("bhsl,hld->bhsd", attn, lat)
    out = out.transpose(0, 2, 1, 3).reshape(B, S, H)

    def ln(v, g, b):
        mu = jnp.mean(v, axis=-1, keepdims=True)
        var = jnp.mean(jnp.square(v - mu), axis=-1, keepdims=True)
        return (v - mu) * lax.rsqrt(var + eps) * g + b

    y = ln(out + x, torch_params["g1"], torch_params["be1"])
    h = y @ torch_params["w1"].T + torch_params["b1"]
    h = jax.nn.gelu(h, approximate=False)
    z = y + (h @ torch_params["w2"].T + torch_params["b2"])
    z = ln(z, torch_params["g2"], torch_params["be2"])
    return z.mean(axis=1)


if __name__ == "__main__":
    # Small, module-consistent shapes (num_query_heads == num_kv_heads, see TODO).
    B, S, H = 4, 8, 128
    num_heads = 4                  # num_query_heads == num_kv_heads
    L = 64                         # num_latents
    mlp_ratio = 4.0
    Mh = int(H * mlp_ratio)

    key = jax.random.PRNGKey(0)
    ks = jax.random.split(key, 8)
    torch_params = {
        "latent_array": jax.random.normal(ks[0], (L, H), jnp.float32),
        "wq": jax.random.normal(ks[1], (H, H), jnp.float32) * 0.05,
        "bq": jax.random.normal(ks[2], (H,), jnp.float32) * 0.05,
        "w1": jax.random.normal(ks[3], (Mh, H), jnp.float32) * 0.05,
        "b1": jax.random.normal(ks[4], (Mh,), jnp.float32) * 0.05,
        "w2": jax.random.normal(ks[5], (H, Mh), jnp.float32) * 0.05,
        "b2": jax.random.normal(ks[6], (H,), jnp.float32) * 0.05,
        "g1": jnp.ones((H,), jnp.float32), "be1": jnp.zeros((H,), jnp.float32),
        "g2": jnp.ones((H,), jnp.float32), "be2": jnp.zeros((H,), jnp.float32),
    }
    x = jax.random.normal(ks[7], (B, S, H), jnp.float32)

    kernel_params = pack_params(torch_params, num_heads=num_heads)
    ref = _reference(x, torch_params, num_heads=num_heads)

    # f32 matmul operands (reference fidelity; approx reciprocal slack in tol).
    out_f32 = jax.block_until_ready(
        latent_gqa_forward(x, kernel_params, num_heads=num_heads))
    assert out_f32.shape == (B, H)
    assert jnp.allclose(out_f32, ref, atol=5e-3, rtol=5e-3), \
        f"f32 max err {jnp.max(jnp.abs(out_f32 - ref))}"

    # bf16 matmul operands, f32 accumulation (v6e/v7x fast path).
    out_bf16 = jax.block_until_ready(
        latent_gqa_forward(x, kernel_params, num_heads=num_heads,
                           compute_dtype=jnp.bfloat16))
    assert jnp.allclose(out_bf16, ref, atol=5e-2, rtol=5e-2), \
        f"bf16 max err {jnp.max(jnp.abs(out_bf16 - ref))}"

    print("KERNEL_OK")
</pallas_src>

<mosaic_0001>
module attributes {stable_mosaic.version = 11 : i64} {
  func.func @_lgqa_kernel(%arg0: i32, %arg1: memref<2x8x128xf32, #tpu.memory_space<vmem>>, %arg2: memref<128x128xf32, #tpu.memory_space<vmem>>, %arg3: memref<1x128xf32, #tpu.memory_space<vmem>>, %arg4: memref<128x256xf32, #tpu.memory_space<vmem>>, %arg5: memref<256x128xf32, #tpu.memory_space<vmem>>, %arg6: memref<256x128xf32, #tpu.memory_space<vmem>>, %arg7: memref<1x128xf32, #tpu.memory_space<vmem>>, %arg8: memref<1x128xf32, #tpu.memory_space<vmem>>, %arg9: memref<128x512xf32, #tpu.memory_space<vmem>>, %arg10: memref<1x512xf32, #tpu.memory_space<vmem>>, %arg11: memref<512x128xf32, #tpu.memory_space<vmem>>, %arg12: memref<1x128xf32, #tpu.memory_space<vmem>>, %arg13: memref<1x128xf32, #tpu.memory_space<vmem>>, %arg14: memref<1x128xf32, #tpu.memory_space<vmem>>, %arg15: memref<1x2x128xf32, #tpu.memory_space<vmem>>) attributes {dimension_semantics = [#tpu.dimension_semantics<parallel>], iteration_bounds = array<i64: 2>, scalar_prefetch = 0 : i64, scratch_operands = 0 : i64, tpu.core_type = #tpu.core_type<tc>, window_params = [{transform_indices = @transform_0, window_bounds = array<i64: 2, 8, 128>}, {pipeline_mode = #tpu.pipeline_mode<synchronous>, transform_indices = @transform_1, window_bounds = array<i64: 128, 128>}, {pipeline_mode = #tpu.pipeline_mode<synchronous>, transform_indices = @transform_2, window_bounds = array<i64: 1, 128>}, {pipeline_mode = #tpu.pipeline_mode<synchronous>, transform_indices = @transform_3, window_bounds = array<i64: 128, 256>}, {pipeline_mode = #tpu.pipeline_mode<synchronous>, transform_indices = @transform_4, window_bounds = array<i64: 256, 128>}, {pipeline_mode = #tpu.pipeline_mode<synchronous>, transform_indices = @transform_5, window_bounds = array<i64: 256, 128>}, {pipeline_mode = #tpu.pipeline_mode<synchronous>, transform_indices = @transform_6, window_bounds = array<i64: 1, 128>}, {pipeline_mode = #tpu.pipeline_mode<synchronous>, transform_indices = @transform_7, window_bounds = array<i64: 1, 128>}, {pipeline_mode = #tpu.pipeline_mode<synchronous>, transform_indices = @transform_8, window_bounds = array<i64: 128, 512>}, {pipeline_mode = #tpu.pipeline_mode<synchronous>, transform_indices = @transform_9, window_bounds = array<i64: 1, 512>}, {pipeline_mode = #tpu.pipeline_mode<synchronous>, transform_indices = @transform_10, window_bounds = array<i64: 512, 128>}, {pipeline_mode = #tpu.pipeline_mode<synchronous>, transform_indices = @transform_11, window_bounds = array<i64: 1, 128>}, {pipeline_mode = #tpu.pipeline_mode<synchronous>, transform_indices = @transform_12, window_bounds = array<i64: 1, 128>}, {pipeline_mode = #tpu.pipeline_mode<synchronous>, transform_indices = @transform_13, window_bounds = array<i64: 1, 128>}, {transform_indices = @transform_14, window_bounds = array<i64: 1, 2, 128>}]} {
    %c0 = arith.constant 0 : index
    %c0_0 = arith.constant 0 : index
    %c0_1 = arith.constant 0 : index
    %0 = vector.load %arg1[%c0, %c0_0, %c0_1] : memref<2x8x128xf32, #tpu.memory_space<vmem>>, vector<2x8x128xf32>
    %1 = vector.shape_cast %0 : vector<2x8x128xf32> to vector<16x128xf32>
    %c0_2 = arith.constant 0 : index
    %c0_3 = arith.constant 0 : index
    %2 = vector.load %arg2[%c0_2, %c0_3] : memref<128x128xf32, #tpu.memory_space<vmem>>, vector<128x128xf32>
    %cst = arith.constant dense<0.000000e+00> : vector<16x128xf32>
    %3 = tpu.matmul %1, %2, %cst {dimension_numbers = #tpu.dot_dimension_numbers<[1], [0], [0], [1], [0, 0, 1, 1], [], []>} : vector<16x128xf32>, vector<128x128xf32>, vector<16x128xf32> -> vector<16x128xf32>
    %c0_4 = arith.constant 0 : index
    %c0_5 = arith.constant 0 : index
    %4 = vector.load %arg3[%c0_4, %c0_5] : memref<1x128xf32, #tpu.memory_space<vmem>>, vector<1x128xf32>
    %5 = vector.broadcast %4 : vector<1x128xf32> to vector<16x128xf32>
    %6 = arith.addf %3, %5 : vector<16x128xf32>
    %c0_6 = arith.constant 0 : index
    %c0_7 = arith.constant 0 : index
    %7 = vector.load %arg4[%c0_6, %c0_7] : memref<128x256xf32, #tpu.memory_space<vmem>>, vector<128x256xf32>
    %cst_8 = arith.constant dense<0.000000e+00> : vector<16x256xf32>
    %8 = tpu.matmul %6, %7, %cst_8 {dimension_numbers = #tpu.dot_dimension_numbers<[1], [0], [0], [1], [0, 0, 1, 1], [], []>} : vector<16x128xf32>, vector<128x256xf32>, vector<16x256xf32> -> vector<16x256xf32>
    %cst_9 = arith.constant 0.176776692 : f32
    %9 = vector.broadcast %cst_9 : f32 to vector<16x256xf32>
    %10 = arith.mulf %8, %9 : vector<16x256xf32>
    %cst_10 = arith.constant dense<0xFF800000> : vector<16xf32>
    %11 = vector.multi_reduction <maximumf>, %10, %cst_10 [1] : vector<16x256xf32> to vector<16xf32>
    %12 = vector.shape_cast %11 : vector<16xf32> to vector<16x1xf32>
    %13 = vector.broadcast %12 : vector<16x1xf32> to vector<16x256xf32>
    %14 = arith.subf %10, %13 : vector<16x256xf32>
    %cst_11 = arith.constant -8.000000e+01 : f32
    %15 = vector.broadcast %cst_11 : f32 to vector<16x256xf32>
    %16 = arith.maximumf %14, %15 : vector<16x256xf32>
    %17 = math.exp %16 : vector<16x256xf32>
    %c0_12 = arith.constant 0 : index
    %c0_13 = arith.constant 0 : index
    %18 = vector.load %arg5[%c0_12, %c0_13] : memref<256x128xf32, #tpu.memory_space<vmem>>, vector<256x128xf32>
    %cst_14 = arith.constant dense<0.000000e+00> : vector<16x128xf32>
    %19 = tpu.matmul %17, %18, %cst_14 {dimension_numbers = #tpu.dot_dimension_numbers<[1], [0], [0], [1], [0, 0, 1, 1], [], []>} : vector<16x256xf32>, vector<256x128xf32>, vector<16x128xf32> -> vector<16x128xf32>
    %c0_15 = arith.constant 0 : index
    %c0_16 = arith.constant 0 : index
    %20 = vector.load %arg6[%c0_15, %c0_16] : memref<256x128xf32, #tpu.memory_space<vmem>>, vector<256x128xf32>
    %cst_17 = arith.constant dense<0.000000e+00> : vector<16x128xf32>
    %21 = tpu.matmul %17, %20, %cst_17 {dimension_numbers = #tpu.dot_dimension_numbers<[1], [0], [0], [1], [0, 0, 1, 1], [], []>} : vector<16x256xf32>, vector<256x128xf32>, vector<16x128xf32> -> vector<16x128xf32>
    %22 = tpu.reciprocal %21 {approx = true} : vector<16x128xf32> -> vector<16x128xf32>
    %23 = arith.mulf %19, %22 : vector<16x128xf32>
    %24 = arith.addf %23, %1 : vector<16x128xf32>
    %c0_18 = arith.constant 0 : index
    %c0_19 = arith.constant 0 : index
    %25 = vector.load %arg7[%c0_18, %c0_19] : memref<1x128xf32, #tpu.memory_space<vmem>>, vector<1x128xf32>
    %c0_20 = arith.constant 0 : index
    %c0_21 = arith.constant 0 : index
    %26 = vector.load %arg8[%c0_20, %c0_21] : memref<1x128xf32, #tpu.memory_space<vmem>>, vector<1x128xf32>
    %cst_22 = arith.constant dense<0.000000e+00> : vector<16xf32>
    %27 = vector.multi_reduction <add>, %24, %cst_22 [1] : vector<16x128xf32> to vector<16xf32>
    %28 = vector.shape_cast %27 : vector<16xf32> to vector<16x1xf32>
    %cst_23 = arith.constant 1.280000e+02 : f32
    %29 = vector.broadcast %cst_23 : f32 to vector<16x1xf32>
    %30 = arith.divf %28, %29 : vector<16x1xf32>
    %31 = vector.broadcast %30 : vector<16x1xf32> to vector<16x128xf32>
    %32 = arith.subf %24, %31 : vector<16x128xf32>
    %33 = arith.mulf %32, %32 : vector<16x128xf32>
    %cst_24 = arith.constant dense<0.000000e+00> : vector<16xf32>
    %34 = vector.multi_reduction <add>, %33, %cst_24 [1] : vector<16x128xf32> to vector<16xf32>
    %35 = vector.shape_cast %34 : vector<16xf32> to vector<16x1xf32>
    %cst_25 = arith.constant 1.280000e+02 : f32
    %36 = vector.broadcast %cst_25 : f32 to vector<16x1xf32>
    %37 = arith.divf %35, %36 : vector<16x1xf32>
    %38 = vector.broadcast %30 : vector<16x1xf32> to vector<16x128xf32>
    %39 = arith.subf %24, %38 : vector<16x128xf32>
    %cst_26 = arith.constant 9.99999974E-6 : f32
    %40 = vector.broadcast %cst_26 : f32 to vector<16x1xf32>
    %41 = arith.addf %37, %40 : vector<16x1xf32>
    %42 = math.rsqrt %41 : vector<16x1xf32>
    %43 = vector.broadcast %42 : vector<16x1xf32> to vector<16x128xf32>
    %44 = arith.mulf %39, %43 : vector<16x128xf32>
    %45 = vector.broadcast %25 : vector<1x128xf32> to vector<16x128xf32>
    %46 = arith.mulf %44, %45 : vector<16x128xf32>
    %47 = vector.broadcast %26 : vector<1x128xf32> to vector<16x128xf32>
    %48 = arith.addf %46, %47 : vector<16x128xf32>
    %c0_27 = arith.constant 0 : index
    %c0_28 = arith.constant 0 : index
    %49 = vector.load %arg9[%c0_27, %c0_28] : memref<128x512xf32, #tpu.memory_space<vmem>>, vector<128x512xf32>
    %cst_29 = arith.constant dense<0.000000e+00> : vector<16x512xf32>
    %50 = tpu.matmul %48, %49, %cst_29 {dimension_numbers = #tpu.dot_dimension_numbers<[1], [0], [0], [1], [0, 0, 1, 1], [], []>} : vector<16x128xf32>, vector<128x512xf32>, vector<16x512xf32> -> vector<16x512xf32>
    %c0_30 = arith.constant 0 : index
    %c0_31 = arith.constant 0 : index
    %51 = vector.load %arg10[%c0_30, %c0_31] : memref<1x512xf32, #tpu.memory_space<vmem>>, vector<1x512xf32>
    %52 = vector.broadcast %51 : vector<1x512xf32> to vector<16x512xf32>
    %53 = arith.addf %50, %52 : vector<16x512xf32>
    %cst_32 = arith.constant 5.000000e-01 : f32
    %54 = vector.broadcast %cst_32 : f32 to vector<16x512xf32>
    %55 = arith.mulf %54, %53 : vector<16x512xf32>
    %cst_33 = arith.constant 0.707106769 : f32
    %56 = vector.broadcast %cst_33 : f32 to vector<16x512xf32>
    %57 = arith.mulf %53, %56 : vector<16x512xf32>
    %58 = math.erf %57 : vector<16x512xf32>
    %cst_34 = arith.constant 1.000000e+00 : f32
    %59 = vector.broadcast %cst_34 : f32 to vector<16x512xf32>
    %60 = arith.addf %59, %58 : vector<16x512xf32>
    %61 = arith.mulf %55, %60 : vector<16x512xf32>
    %c0_35 = arith.constant 0 : index
    %c0_36 = arith.constant 0 : index
    %62 = vector.load %arg11[%c0_35, %c0_36] : memref<512x128xf32, #tpu.memory_space<vmem>>, vector<512x128xf32>
    %cst_37 = arith.constant dense<0.000000e+00> : vector<16x128xf32>
    %63 = tpu.matmul %61, %62, %cst_37 {dimension_numbers = #tpu.dot_dimension_numbers<[1], [0], [0], [1], [0, 0, 1, 1], [], []>} : vector<16x512xf32>, vector<512x128xf32>, vector<16x128xf32> -> vector<16x128xf32>
    %c0_38 = arith.constant 0 : index
    %c0_39 = arith.constant 0 : index
    %64 = vector.load %arg12[%c0_38, %c0_39] : memref<1x128xf32, #tpu.memory_space<vmem>>, vector<1x128xf32>
    %65 = vector.broadcast %64 : vector<1x128xf32> to vector<16x128xf32>
    %66 = arith.addf %63, %65 : vector<16x128xf32>
    %67 = arith.addf %48, %66 : vector<16x128xf32>
    %c0_40 = arith.constant 0 : index
    %c0_41 = arith.constant 0 : index
    %68 = vector.load %arg13[%c0_40, %c0_41] : memref<1x128xf32, #tpu.memory_space<vmem>>, vector<1x128xf32>
    %c0_42 = arith.constant 0 : index
    %c0_43 = arith.constant 0 : index
    %69 = vector.load %arg14[%c0_42, %c0_43] : memref<1x128xf32, #tpu.memory_space<vmem>>, vector<1x128xf32>
    %cst_44 = arith.constant dense<0.000000e+00> : vector<16xf32>
    %70 = vector.multi_reduction <add>, %67, %cst_44 [1] : vector<16x128xf32> to vector<16xf32>
    %71 = vector.shape_cast %70 : vector<16xf32> to vector<16x1xf32>
    %cst_45 = arith.constant 1.280000e+02 : f32
    %72 = vector.broadcast %cst_45 : f32 to vector<16x1xf32>
    %73 = arith.divf %71, %72 : vector<16x1xf32>
    %74 = vector.broadcast %73 : vector<16x1xf32> to vector<16x128xf32>
    %75 = arith.subf %67, %74 : vector<16x128xf32>
    %76 = arith.mulf %75, %75 : vector<16x128xf32>
    %cst_46 = arith.constant dense<0.000000e+00> : vector<16xf32>
    %77 = vector.multi_reduction <add>, %76, %cst_46 [1] : vector<16x128xf32> to vector<16xf32>
    %78 = vector.shape_cast %77 : vector<16xf32> to vector<16x1xf32>
    %cst_47 = arith.constant 1.280000e+02 : f32
    %79 = vector.broadcast %cst_47 : f32 to vector<16x1xf32>
    %80 = arith.divf %78, %79 : vector<16x1xf32>
    %81 = vector.broadcast %73 : vector<16x1xf32> to vector<16x128xf32>
    %82 = arith.subf %67, %81 : vector<16x128xf32>
    %cst_48 = arith.constant 9.99999974E-6 : f32
    %83 = vector.broadcast %cst_48 : f32 to vector<16x1xf32>
    %84 = arith.addf %80, %83 : vector<16x1xf32>
    %85 = math.rsqrt %84 : vector<16x1xf32>
    %86 = vector.broadcast %85 : vector<16x1xf32> to vector<16x128xf32>
    %87 = arith.mulf %82, %86 : vector<16x128xf32>
    %88 = vector.broadcast %68 : vector<1x128xf32> to vector<16x128xf32>
    %89 = arith.mulf %87, %88 : vector<16x128xf32>
    %90 = vector.broadcast %69 : vector<1x128xf32> to vector<16x128xf32>
    %91 = arith.addf %89, %90 : vector<16x128xf32>
    %92 = vector.shape_cast %91 : vector<16x128xf32> to vector<2x8x128xf32>
    %cst_49 = arith.constant dense<0.000000e+00> : vector<2x128xf32>
    %93 = vector.multi_reduction <add>, %92, %cst_49 [1] : vector<2x8x128xf32> to vector<2x128xf32>
    %cst_50 = arith.constant 8.000000e+00 : f32
    %94 = vector.broadcast %cst_50 : f32 to vector<2x128xf32>
    %95 = arith.divf %93, %94 : vector<2x128xf32>
    %c0_51 = arith.constant 0 : index
    %c0_52 = arith.constant 0 : index
    %c0_53 = arith.constant 0 : index
    %96 = vector.load %arg15[%c0_51, %c0_52, %c0_53] : memref<1x2x128xf32, #tpu.memory_space<vmem>>, vector<1x2x128xf32>
    %97 = vector.shape_cast %96 : vector<1x2x128xf32> to vector<2x128xf32>
    %98 = vector.shape_cast %95 : vector<2x128xf32> to vector<1x2x128xf32>
    tpu.vector_store %arg15[%c0_51, %c0_52, %c0_53], %98 {strides = array<i32>} : memref<1x2x128xf32, #tpu.memory_space<vmem>>, vector<1x2x128xf32>,
    return
  }
  func.func @transform_0(%arg0: i32) -> (i32, i32, i32) {
    %c0_i32 = arith.constant 0 : i32
    %c0_i32_0 = arith.constant 0 : i32
    %c0_i32_1 = arith.constant 0 : i32
    return %arg0, %c0_i32, %c0_i32_0 : i32, i32, i32
  }
  func.func @transform_1(%arg0: i32) -> (i32, i32) {
    %c0_i32 = arith.constant 0 : i32
    %c0_i32_0 = arith.constant 0 : i32
    %c0_i32_1 = arith.constant 0 : i32
    return %c0_i32, %c0_i32_0 : i32, i32
  }
  func.func @transform_2(%arg0: i32) -> (i32, i32) {
    %c0_i32 = arith.constant 0 : i32
    %c0_i32_0 = arith.constant 0 : i32
    %c0_i32_1 = arith.constant 0 : i32
    return %c0_i32, %c0_i32_0 : i32, i32
  }
  func.func @transform_3(%arg0: i32) -> (i32, i32) {
    %c0_i32 = arith.constant 0 : i32
    %c0_i32_0 = arith.constant 0 : i32
    %c0_i32_1 = arith.constant 0 : i32
    return %c0_i32, %c0_i32_0 : i32, i32
  }
  func.func @transform_4(%arg0: i32) -> (i32, i32) {
    %c0_i32 = arith.constant 0 : i32
    %c0_i32_0 = arith.constant 0 : i32
    %c0_i32_1 = arith.constant 0 : i32
    return %c0_i32, %c0_i32_0 : i32, i32
  }
  func.func @transform_5(%arg0: i32) -> (i32, i32) {
    %c0_i32 = arith.constant 0 : i32
    %c0_i32_0 = arith.constant 0 : i32
    %c0_i32_1 = arith.constant 0 : i32
    return %c0_i32, %c0_i32_0 : i32, i32
  }
  func.func @transform_6(%arg0: i32) -> (i32, i32) {
    %c0_i32 = arith.constant 0 : i32
    %c0_i32_0 = arith.constant 0 : i32
    %c0_i32_1 = arith.constant 0 : i32
    return %c0_i32, %c0_i32_0 : i32, i32
  }
  func.func @transform_7(%arg0: i32) -> (i32, i32) {
    %c0_i32 = arith.constant 0 : i32
    %c0_i32_0 = arith.constant 0 : i32
    %c0_i32_1 = arith.constant 0 : i32
    return %c0_i32, %c0_i32_0 : i32, i32
  }
  func.func @transform_8(%arg0: i32) -> (i32, i32) {
    %c0_i32 = arith.constant 0 : i32
    %c0_i32_0 = arith.constant 0 : i32
    %c0_i32_1 = arith.constant 0 : i32
    return %c0_i32, %c0_i32_0 : i32, i32
  }
  func.func @transform_9(%arg0: i32) -> (i32, i32) {
    %c0_i32 = arith.constant 0 : i32
    %c0_i32_0 = arith.constant 0 : i32
    %c0_i32_1 = arith.constant 0 : i32
    return %c0_i32, %c0_i32_0 : i32, i32
  }
  func.func @transform_10(%arg0: i32) -> (i32, i32) {
    %c0_i32 = arith.constant 0 : i32
    %c0_i32_0 = arith.constant 0 : i32
    %c0_i32_1 = arith.constant 0 : i32
    return %c0_i32, %c0_i32_0 : i32, i32
  }
  func.func @transform_11(%arg0: i32) -> (i32, i32) {
    %c0_i32 = arith.constant 0 : i32
    %c0_i32_0 = arith.constant 0 : i32
    %c0_i32_1 = arith.constant 0 : i32
    return %c0_i32, %c0_i32_0 : i32, i32
  }
  func.func @transform_12(%arg0: i32) -> (i32, i32) {
    %c0_i32 = arith.constant 0 : i32
    %c0_i32_0 = arith.constant 0 : i32
    %c0_i32_1 = arith.constant 0 : i32
    return %c0_i32, %c0_i32_0 : i32, i32
  }
  func.func @transform_13(%arg0: i32) -> (i32, i32) {
    %c0_i32 = arith.constant 0 : i32
    %c0_i32_0 = arith.constant 0 : i32
    %c0_i32_1 = arith.constant 0 : i32
    return %c0_i32, %c0_i32_0 : i32, i32
  }
  func.func @transform_14(%arg0: i32) -> (i32, i32, i32) {
    %c0_i32 = arith.constant 0 : i32
    %c0_i32_0 = arith.constant 0 : i32
    %c0_i32_1 = arith.constant 0 : i32
    return %arg0, %c0_i32, %c0_i32_0 : i32, i32, i32
  }
}

</mosaic_0001>

<bundles_post_ra>
// kernel: tpu_custom_call.1
= control target key start
LH: loop header
LB: loop body
LE: loop exit
PB: predicated region body
PF: predicated region fallthrough
CT: control target
= control target key end

     0   :  { %s3777_s0 = inlined_call_operand.hbm [shape: f32[4,8,128], index: 0, kind: input, shape index: {}]   ;;  %s3778_s1 = inlined_call_operand.hbm [shape: f32[128,128], index: 1, kind: input, shape index: {}]   ;;  %s3779_s2 = inlined_call_operand.hbm [shape: f32[1,128], index: 2, kind: input, shape index: {}]   ;;  %s3780_s3 = inlined_call_operand.hbm [shape: f32[128,256], index: 3, kind: input, shape index: {}]   ;;  %s3781_s4 = inlined_call_operand.hbm [shape: f32[256,128], index: 4, kind: input, shape index: {}]   ;;  %s3782_s5 = inlined_call_operand.hbm [shape: f32[256,128], index: 5, kind: input, shape index: {}]   ;;  %s3783_s6 = inlined_call_operand.hbm [shape: f32[1,128], index: 6, kind: input, shape index: {}]   ;;  %s3784_s7 = inlined_call_operand.hbm [shape: f32[1,128], index: 7, kind: input, shape index: {}]   ;;  %s3785_s8 = inlined_call_operand.hbm [shape: f32[128,512], index: 8, kind: input, shape index: {}]   ;;  %s3786_s9 = inlined_call_operand.hbm [shape: f32[1,512], index: 9, kind: input, shape index: {}]   ;;  %s3787_s10 = inlined_call_operand.hbm [shape: f32[512,128], index: 10, kind: input, shape index: {}]   ;;  %s3788_s11 = inlined_call_operand.hbm [shape: f32[1,128], index: 11, kind: input, shape index: {}]   ;;  %s3789_s12 = inlined_call_operand.hbm [shape: f32[1,128], index: 12, kind: input, shape index: {}]   ;;  %s3790_s13 = inlined_call_operand.hbm [shape: f32[1,128], index: 13, kind: input, shape index: {}]   ;;  %s3791_s14 = inlined_call_operand.hbm [shape: f32[2,2,128], index: 14, kind: output, shape index: {}]  }
   0x1   :  { %3806 = sst [smem:[#allocation39_spill]] %s3777_s0 }
   0x2   :  { %3807 = sst [smem:[#allocation40_spill]] %s3778_s1 }
   0x3   :  { %3808 = sst [smem:[#allocation41_spill]] %s3779_s2 }
   0x4   :  { %3809 = sst [smem:[#allocation42_spill]] %s3780_s3 }
   0x5   :  { %3810 = sst [smem:[#allocation43_spill]] %s3791_s14 }
   0x6   :  { %19 = vsyncpa [#allocation3], 0 }
   0x7   :  { %21 = vsyncpa [#allocation3 + $0x1], 0 }
   0x8   :  { %22 = vsyncpa [#allocation6], 0 }
   0x9   :  { %23 = vsyncpa [#allocation9], 0 }
   0xa   :  { %24 = vsyncpa [#allocation12], 0 }
   0xb   :  { %25 = vsyncpa [#allocation15], 0 }
   0xc   :  { %26 = vsyncpa [#allocation18], 0 }
   0xd   :  { %27 = vsyncpa [#allocation21], 0 }
   0xe   :  { %28 = vsyncpa [#allocation24], 0 }
   0xf   :  { %29 = vsyncpa [#allocation4], 0 }
  0x10   :  { %31 = vsyncpa [#allocation4 + $0x1], 0  ;;  %s3244_s29 = smov 0   ;;  %s3246_s30 = smov 0  }
  0x11   :  { %s3248_s15 = smov 0   ;;  %s3250_s16 = smov 0  }
  0x12 LB: > { %3811 = sst [smem:[#allocation35_spill]] %s3133_s29  ;;  %s3147_s17 = smov [#allocation5]   ;;  %s3145_s16 = sphi %s3250_s16, %s3858_s16   ;;  %s3141_s15 = sphi %s3248_s15, %s3857_s15   ;;  %s3137_s30 = sphi %s3246_s30, %s3856_s30   ;;  %s3133_s29 = sphi %s3244_s29, %s3855_s29  }
  0x13   : > { %3812 = sst [smem:[#allocation36_spill]] %s3137_s30  ;;  %s379_s18 = sshll.u32 %s3147_s17, 4  ;;  %s3270_s18 = int_to_ptr.vmem [resolvable:$true] %s379_s18 }
  0x14   : > { %s3265_s19 = sadd.s32 4294967295, %s3145_s16   ;;  %p1931_p0 = scmp.ge.s32.totalorder %s3145_s16, 1 }
  0x15   : > { %3813 = sst [smem:[#allocation37_spill]] %s3265_s19  ;;  %p3801_p1 = scmp.eq.s32.totalorder %s3265_s19, 0 }
  0x16   : > { %p367_p2 = scmp.lt.s32.totalorder %s3145_s16, 3  ;;  %s3148_s21 = smov [#allocation8]  }
  0x17   : > { %s403_s22 = sshll.u32 %s3148_s21, 4  ;;  %s3149_s24 = smov [#allocation11]   ;;  %s3285_s22 = int_to_ptr.vmem [resolvable:$true] %s403_s22 }
  0x18   : > { %p3272_p3 = pnand %p1931_p0, %p367_p2  ;;  %s3287_s25 = sshll.u32 %s3149_s24, 4  ;;  %s430_s25 = int_to_ptr.vmem [resolvable:$true] %s3287_s25 }
  0x19   : > { %s3817_s1 = sld [smem:[#allocation40_spill]] }
  0x1a   : > { %s3814_s20 = scalar_select %p3272_p3, 1, 0 }
  0x1b   : > { %p2493_p5 = pneg %p3272_p3 }
  0x1c   : > { %3815 = sst [smem:[#allocation38_spill]] %s3814_s20 }
  0x1d   : > { %p3281_p6 = pnand %p2493_p5, %p3801_p1 }
  0x1f   : > { %s2657_s28 = scalar_lea.hbm %s3817_s1, 2048  ;;  %p3297_p8 = pneg %p3281_p6 }
  0x20   : > { %p2658_p7 = scmp.ne.s32.totalorder %s3817_s1, %s2657_s28  ;;  %p2664_p11 = scmp.lt.u32.totalorder %s2657_s28, %s3817_s1 }
  0x22   : > { %p2660_p9 = pnand %p3297_p8, %p2658_p7 }
  0x24   : > { %p2661_p10 = pneg %p2660_p9 }
  0x26   : > { %p2666_p12 = pnand %p2664_p11, %p2661_p10 }
  0x28   : > { %2669 = shalt.err (!%p2666_p12)
}
  0x29   : > { %s2670_s14 = scalar_lea.vmem %s3270_s18, 2048  ;;  %p2678_p5 = scmp.lt.s32.totalorder %s3270_s18, %s3270_s18 }
  0x2a   : > { %p2671_p13 = scmp.ne.s32.totalorder %s3270_s18, %s2670_s14  ;;  %p2679_p4 = scmp.lt.s32.totalorder %s2670_s14, %s2670_s14 }
  0x2c   : > { %p2673_p0 = pnand %p2671_p13, %p3297_p8  ;;  %p2680_p7 = por %p2679_p4, %p2678_p5 }
  0x2e   : > { %p2674_p2 = pneg %p2673_p0 }
  0x30   : > { %p2681_p9 = pnand %p2680_p7, %p2674_p2 }
  0x32   : > { %2684 = shalt.err (!%p2681_p9)
}
  0x33   : > { %s3799_s26 = smov 128   ;;  %s3803_s20 = smov 8  }
  0x34   : > { %2496 = dma.hbm_to_vmem [thread:$0]  (!%p3281_p6), %s3817_s1, 2048, %s3270_s18, [#allocation6], %s3799_s26, %s3799_s26, %s3803_s20  }
  0x35   : > { %s3819_s3 = sld [smem:[#allocation42_spill]] }
  0x3b   : > { %s2685_s14 = scalar_lea.hbm %s3819_s3, 4096 }
  0x3c   : > { %p2686_p4 = scmp.ne.s32.totalorder %s3819_s3, %s2685_s14  ;;  %p2692_p12 = scmp.lt.u32.totalorder %s2685_s14, %s3819_s3 }
  0x3e   : > { %p2688_p10 = pnand %p2686_p4, %p3297_p8 }
  0x40   : > { %p2689_p11 = pneg %p2688_p10 }
  0x42   : > { %p2694_p13 = pnand %p2692_p12, %p2689_p11 }
  0x44   : > { %2697 = shalt.err (!%p2694_p13)
}
  0x45   : > { %s2698_s18 = scalar_lea.vmem %s3285_s22, 4096  ;;  %p2706_p7 = scmp.lt.s32.totalorder %s3285_s22, %s3285_s22 }
  0x46   : > { %p2699_p0 = scmp.ne.s32.totalorder %s3285_s22, %s2698_s18  ;;  %p2707_p9 = scmp.lt.s32.totalorder %s2698_s18, %s2698_s18 }
  0x48   : > { %p2701_p2 = pnand %p2699_p0, %p3297_p8  ;;  %p2708_p4 = por %p2707_p9, %p2706_p7 }
  0x4a   : > { %p2702_p5 = pneg %p2701_p2 }
  0x4c   : > { %p2709_p10 = pnand %p2708_p4, %p2702_p5 }
  0x4e   : > { %2712 = shalt.err (!%p2709_p10)
}
  0x4f   : > { %s3152_s0 = smov 256   ;;  %s3153_s29 = smov 16  }
  0x50   : > { %2502 = dma.hbm_to_vmem [thread:$0]  (!%p3281_p6), %s3819_s3, 4096, %s3285_s22, [#allocation9], %s3152_s0, %s3152_s0, %s3153_s29  }
  0x51   : > { %s2713_s17 = scalar_lea.hbm %s3782_s5, 4096 }
  0x52   : > { %p2714_p11 = scmp.ne.s32.totalorder %s3782_s5, %s2713_s17  ;;  %p2720_p0 = scmp.lt.u32.totalorder %s2713_s17, %s3782_s5 }
  0x54   : > { %p2716_p12 = pnand %p2714_p11, %p3297_p8 }
  0x56   : > { %p2717_p13 = pneg %p2716_p12 }
  0x58   : > { %p2722_p2 = pnand %p2720_p0, %p2717_p13 }
  0x5a   : > { %2725 = shalt.err (!%p2722_p2)
}
  0x5b   : > { %s2726_s30 = scalar_lea.vmem %s430_s25, 4096  ;;  %p2734_p4 = scmp.lt.s32.totalorder %s430_s25, %s430_s25 }
  0x5c   : > { %p2727_p5 = scmp.ne.s32.totalorder %s430_s25, %s2726_s30  ;;  %p2735_p10 = scmp.lt.s32.totalorder %s2726_s30, %s2726_s30 }
  0x5e   : > { %p2729_p7 = pnand %p2727_p5, %p3297_p8  ;;  %p2736_p1 = por %p2735_p10, %p2734_p4 }
  0x60   : > { %p2730_p9 = pneg %p2729_p7 }
  0x62   : > { %p2737_p3 = pnand %p2736_p1, %p2730_p9 }
  0x64   : > { %2740 = shalt.err (!%p2737_p3)
}
  0x65   : > { %s3820_s22 = smov 128   ;;  %s3154_s29 = smov [#allocation14]  }
  0x66   : > { %2508 = dma.hbm_to_vmem [thread:$0]  (!%p3281_p6), %s3782_s5, 4096, %s430_s25, [#allocation12], %s3820_s22, %s3820_s22, %s3803_s20  }
  0x67   : > { %s454_s19 = sshll.u32 %s3154_s29, 4  ;;  %s3155_s27 = smov [#allocation17]   ;;  %s455_s19 = int_to_ptr.vmem [resolvable:$true] %s454_s19 }
  0x68   : > { %s478_s28 = sshll.u32 %s3155_s27, 4  ;;  %s2741_s14 = scalar_lea.hbm %s3784_s7, 16  ;;  %s479_s28 = int_to_ptr.vmem [resolvable:$true] %s478_s28 }
  0x69   : > { %p2742_p1 = scmp.ne.s32.totalorder %s3784_s7, %s2741_s14  ;;  %p2748_p12 = scmp.lt.u32.totalorder %s2741_s14, %s3784_s7 }
  0x6b   : > { %p2744_p3 = pnand %p2742_p1, %p3297_p8 }
  0x6d   : > { %p2745_p11 = pneg %p2744_p3 }
  0x6f   : > { %p2750_p13 = pnand %p2748_p12, %p2745_p11 }
  0x71   : > { %2753 = shalt.err (!%p2750_p13)
}
  0x72   : > { %s2754_s25 = scalar_lea.vmem %s455_s19, 16  ;;  %s2761_s0 = scalar_lea.vmem %s455_s19, 32 }
  0x73   : > { %p2755_p0 = scmp.ne.s32.totalorder %s455_s19, %s2754_s25  ;;  %p2762_p7 = scmp.lt.s32.totalorder %s455_s19, %s455_s19 }
  0x74   : > { %p2763_p9 = scmp.lt.s32.totalorder %s2761_s0, %s2754_s25 }
  0x75   : > { %p2757_p2 = pnand %p2755_p0, %p3297_p8 }
  0x76   : > { %p2764_p4 = por %p2763_p9, %p2762_p7 }
  0x77   : > { %p2758_p5 = pneg %p2757_p2 }
  0x79   : > { %p2765_p10 = pnand %p2764_p4, %p2758_p5 }
  0x7b   : > { %2768 = shalt.err (!%p2765_p10)
}
  0x7c   : > { %2514 = dma.hbm_to_vmem [thread:$0]  (!%p3281_p6), %s3784_s7, 16, %s455_s19, [#allocation15]  }
  0x7d   : > { %s2769_s24 = scalar_lea.hbm %s3786_s9, 64 }
  0x7e   : > { %p2770_p1 = scmp.ne.s32.totalorder %s3786_s9, %s2769_s24  ;;  %p2776_p12 = scmp.lt.u32.totalorder %s2769_s24, %s3786_s9 }
  0x80   : > { %p2772_p3 = pnand %p2770_p1, %p3297_p8 }
  0x82   : > { %p2773_p11 = pneg %p2772_p3 }
  0x84   : > { %p2778_p13 = pnand %p2776_p12, %p2773_p11 }
  0x86   : > { %2781 = shalt.err (!%p2778_p13)
}
  0x87   : > { %s2782_s25 = scalar_lea.vmem %s479_s28, 64  ;;  %p2790_p7 = scmp.lt.s32.totalorder %s479_s28, %s479_s28 }
  0x88   : > { %p2783_p0 = scmp.ne.s32.totalorder %s479_s28, %s2782_s25  ;;  %p2791_p9 = scmp.lt.s32.totalorder %s2782_s25, %s2782_s25 }
  0x8a   : > { %p2785_p2 = pnand %p2783_p0, %p3297_p8  ;;  %p2792_p4 = por %p2791_p9, %p2790_p7 }
  0x8c   : > { %p2786_p5 = pneg %p2785_p2 }
  0x8e   : > { %p2793_p10 = pnand %p2792_p4, %p2786_p5 }
  0x90   : > { %2796 = shalt.err (!%p2793_p10)
}
  0x91   : > { %2520 = dma.hbm_to_vmem [thread:$0]  (!%p3281_p6), %s3786_s9, 64, %s479_s28, [#allocation18]  }
  0x92   : > { %s3156_s29 = smov [#allocation20]   ;;  %s3157_s1 = smov [#allocation7]  }
  0x93   : > { %s502_s27 = sshll.u32 %s3156_s29, 4  ;;  %s393_s17 = sshll.u32 %s3157_s1, 4  ;;  %s503_s27 = int_to_ptr.vmem [resolvable:$true] %s502_s27  ;;  %s394_s17 = int_to_ptr.vmem [resolvable:$true] %s393_s17 }
  0x94   : > { %s2797_s18 = scalar_lea.hbm %s3788_s11, 16 }
  0x95   : > { %p2798_p1 = scmp.ne.s32.totalorder %s3788_s11, %s2797_s18  ;;  %p2804_p12 = scmp.lt.u32.totalorder %s2797_s18, %s3788_s11 }
  0x97   : > { %p2800_p3 = pnand %p2798_p1, %p3297_p8 }
  0x99   : > { %p2801_p11 = pneg %p2800_p3 }
  0x9b   : > { %p2806_p13 = pnand %p2804_p12, %p2801_p11 }
  0x9d   : > { %2809 = shalt.err (!%p2806_p13)
}
  0x9e   : > { %s2810_s28 = scalar_lea.vmem %s503_s27, 16  ;;  %s2817_s0 = scalar_lea.vmem %s503_s27, 32 }
  0x9f   : > { %p2811_p0 = scmp.ne.s32.totalorder %s503_s27, %s2810_s28  ;;  %p2818_p7 = scmp.lt.s32.totalorder %s503_s27, %s503_s27 }
  0xa0   : > { %p2819_p9 = scmp.lt.s32.totalorder %s2817_s0, %s2810_s28 }
  0xa1   : > { %p2813_p2 = pnand %p2811_p0, %p3297_p8 }
  0xa2   : > { %p2820_p4 = por %p2819_p9, %p2818_p7 }
  0xa3   : > { %p2814_p5 = pneg %p2813_p2 }
  0xa5   : > { %p2821_p10 = pnand %p2820_p4, %p2814_p5 }
  0xa7   : > { %2824 = shalt.err (!%p2821_p10)
}
  0xa8   : > { %2526 = dma.hbm_to_vmem [thread:$0]  (!%p3281_p6), %s3788_s11, 16, %s503_s27, [#allocation21]  }
  0xa9   : > { %s3821_s2 = sld [smem:[#allocation41_spill]] }
  0xaf   : > { %s2825_s18 = scalar_lea.hbm %s3821_s2, 16 }
  0xb0   : > { %p2826_p1 = scmp.ne.s32.totalorder %s3821_s2, %s2825_s18  ;;  %p2832_p12 = scmp.lt.u32.totalorder %s2825_s18, %s3821_s2 }
  0xb2   : > { %p2828_p3 = pnand %p2826_p1, %p3297_p8 }
  0xb4   : > { %p2829_p11 = pneg %p2828_p3 }
  0xb6   : > { %p2834_p13 = pnand %p2832_p12, %p2829_p11 }
  0xb8   : > { %2837 = shalt.err (!%p2834_p13)
}
  0xb9   : > { %s2838_s28 = scalar_lea.vmem %s394_s17, 16  ;;  %s2845_s27 = scalar_lea.vmem %s394_s17, 32 }
  0xba   : > { %p2839_p0 = scmp.ne.s32.totalorder %s394_s17, %s2838_s28  ;;  %p2846_p7 = scmp.lt.s32.totalorder %s394_s17, %s394_s17 }
  0xbb   : > { %p2847_p9 = scmp.lt.s32.totalorder %s2845_s27, %s2838_s28 }
  0xbc   : > { %p2841_p2 = pnand %p2839_p0, %p3297_p8 }
  0xbd   : > { %p2848_p4 = por %p2847_p9, %p2846_p7 }
  0xbe   : > { %p2842_p5 = pneg %p2841_p2 }
  0xc0   : > { %p2849_p10 = pnand %p2848_p4, %p2842_p5 }
  0xc2   : > { %2852 = shalt.err (!%p2849_p10)
}
  0xc3   : > { %2499 = dma.hbm_to_vmem [thread:$0]  (!%p3281_p6), %s3821_s2, 16, %s394_s17, [#allocation6]  }
  0xc4   : > { %s3158_s1 = smov [#allocation10]   ;;  %s3159_s14 = smov [#allocation13]  }
  0xc5   : > { %s416_s24 = sshll.u32 %s3158_s1, 4  ;;  %s443_s18 = sshll.u32 %s3159_s14, 4  ;;  %s417_s24 = int_to_ptr.vmem [resolvable:$true] %s416_s24  ;;  %s444_s18 = int_to_ptr.vmem [resolvable:$true] %s443_s18 }
  0xc6   : > { %s2853_s25 = scalar_lea.hbm %s3781_s4, 4096 }
  0xc7   : > { %p2854_p1 = scmp.ne.s32.totalorder %s3781_s4, %s2853_s25  ;;  %p2860_p12 = scmp.lt.u32.totalorder %s2853_s25, %s3781_s4 }
  0xc9   : > { %p2856_p3 = pnand %p2854_p1, %p3297_p8 }
  0xcb   : > { %p2857_p11 = pneg %p2856_p3 }
  0xcd   : > { %p2862_p13 = pnand %p2860_p12, %p2857_p11 }
  0xcf   : > { %2865 = shalt.err (!%p2862_p13)
}
  0xd0   : > { %s2866_s17 = scalar_lea.vmem %s417_s24, 4096  ;;  %p2874_p7 = scmp.lt.s32.totalorder %s417_s24, %s417_s24 }
  0xd1   : > { %p2867_p0 = scmp.ne.s32.totalorder %s417_s24, %s2866_s17  ;;  %p2875_p9 = scmp.lt.s32.totalorder %s2866_s17, %s2866_s17 }
  0xd3   : > { %p2869_p2 = pnand %p2867_p0, %p3297_p8  ;;  %p2876_p4 = por %p2875_p9, %p2874_p7 }
  0xd5   : > { %p2870_p5 = pneg %p2869_p2 }
  0xd7   : > { %p2877_p10 = pnand %p2876_p4, %p2870_p5 }
  0xd9   : > { %2880 = shalt.err (!%p2877_p10)
}
  0xda   : > { %2505 = dma.hbm_to_vmem [thread:$0]  (!%p3281_p6), %s3781_s4, 4096, %s417_s24, [#allocation9], %s3820_s22, %s3820_s22, %s3803_s20  }
  0xdb   : > { %s2881_s26 = scalar_lea.hbm %s3783_s6, 16 }
  0xdc   : > { %p2882_p1 = scmp.ne.s32.totalorder %s3783_s6, %s2881_s26  ;;  %p2888_p12 = scmp.lt.u32.totalorder %s2881_s26, %s3783_s6 }
  0xde   : > { %p2884_p3 = pnand %p2882_p1, %p3297_p8 }
  0xe0   : > { %p2885_p11 = pneg %p2884_p3 }
  0xe2   : > { %p2890_p13 = pnand %p2888_p12, %p2885_p11 }
  0xe4   : > { %2893 = shalt.err (!%p2890_p13)
}
  0xe5   : > { %s2894_s0 = scalar_lea.vmem %s444_s18, 16  ;;  %s2901_s24 = scalar_lea.vmem %s444_s18, 32 }
  0xe6   : > { %p2895_p0 = scmp.ne.s32.totalorder %s444_s18, %s2894_s0  ;;  %p2902_p7 = scmp.lt.s32.totalorder %s444_s18, %s444_s18 }
  0xe7   : > { %p2903_p9 = scmp.lt.s32.totalorder %s2901_s24, %s2894_s0 }
  0xe8   : > { %p2897_p2 = pnand %p2895_p0, %p3297_p8 }
  0xe9   : > { %p2904_p4 = por %p2903_p9, %p2902_p7 }
  0xea   : > { %p2898_p5 = pneg %p2897_p2 }
  0xec   : > { %p2905_p10 = pnand %p2904_p4, %p2898_p5 }
  0xee   : > { %2908 = shalt.err (!%p2905_p10)
}
  0xef   : > { %2511 = dma.hbm_to_vmem [thread:$0]  (!%p3281_p6), %s3783_s6, 16, %s444_s18, [#allocation12]  }
  0xf0   : > { %s3160_s1 = smov [#allocation16]   ;;  %s2909_s25 = scalar_lea.hbm %s3785_s8, 8192 }
  0xf1   : > { %s464_s14 = sshll.u32 %s3160_s1, 4  ;;  %p2910_p1 = scmp.ne.s32.totalorder %s3785_s8, %s2909_s25  ;;  %s465_s14 = int_to_ptr.vmem [resolvable:$true] %s464_s14 }
  0xf2   : > { %p2916_p12 = scmp.lt.u32.totalorder %s2909_s25, %s3785_s8 }
  0xf3   : > { %p2912_p3 = pnand %p2910_p1, %p3297_p8 }
  0xf5   : > { %p2913_p11 = pneg %p2912_p3 }
  0xf7   : > { %p2918_p13 = pnand %p2916_p12, %p2913_p11 }
  0xf9   : > { %2921 = shalt.err (!%p2918_p13)
}
  0xfa   : > { %s2922_s18 = scalar_lea.vmem %s465_s14, 8192  ;;  %p2930_p7 = scmp.lt.s32.totalorder %s465_s14, %s465_s14 }
  0xfb   : > { %p2923_p0 = scmp.ne.s32.totalorder %s465_s14, %s2922_s18  ;;  %p2931_p9 = scmp.lt.s32.totalorder %s2922_s18, %s2922_s18 }
  0xfd   : > { %p2925_p2 = pnand %p2923_p0, %p3297_p8  ;;  %p2932_p4 = por %p2931_p9, %p2930_p7 }
  0xff   : > { %p2926_p5 = pneg %p2925_p2 }
 0x101   : > { %p2933_p10 = pnand %p2932_p4, %p2926_p5 }
 0x103   : > { %2936 = shalt.err (!%p2933_p10)
}
 0x104   : > { %s3161_s24 = smov 512   ;;  %s3162_s17 = smov 32  }
 0x105   : > { %2517 = dma.hbm_to_vmem [thread:$0]  (!%p3281_p6), %s3785_s8, 8192, %s465_s14, [#allocation15], %s3161_s24, %s3161_s24, %s3162_s17  }
 0x106   : > { %s3163_s30 = smov [#allocation19]   ;;  %s3164_s25 = smov [#allocation22]  }
 0x107   : > { %s488_s26 = sshll.u32 %s3163_s30, 4  ;;  %s513_s19 = sshll.u32 %s3164_s25, 4  ;;  %s489_s26 = int_to_ptr.vmem [resolvable:$true] %s488_s26  ;;  %s3495_s19 = int_to_ptr.vmem [resolvable:$true] %s513_s19 }
 0x108   : > { %s2937_s0 = scalar_lea.hbm %s3787_s10, 8192 }
 0x109   : > { %p2938_p1 = scmp.ne.s32.totalorder %s3787_s10, %s2937_s0  ;;  %p2944_p12 = scmp.lt.u32.totalorder %s2937_s0, %s3787_s10 }
 0x10b   : > { %p2940_p3 = pnand %p2938_p1, %p3297_p8 }
 0x10d   : > { %p2941_p11 = pneg %p2940_p3 }
 0x10f   : > { %p2946_p13 = pnand %p2944_p12, %p2941_p11 }
 0x111   : > { %2949 = shalt.err (!%p2946_p13)
}
 0x112   : > { %s2950_s24 = scalar_lea.vmem %s489_s26, 8192  ;;  %p2958_p7 = scmp.lt.s32.totalorder %s489_s26, %s489_s26 }
 0x113   : > { %p2951_p0 = scmp.ne.s32.totalorder %s489_s26, %s2950_s24  ;;  %p2959_p9 = scmp.lt.s32.totalorder %s2950_s24, %s2950_s24 }
 0x115   : > { %p2953_p2 = pnand %p2951_p0, %p3297_p8  ;;  %p2960_p4 = por %p2959_p9, %p2958_p7 }
 0x117   : > { %p2954_p5 = pneg %p2953_p2 }
 0x119   : > { %p2961_p10 = pnand %p2960_p4, %p2954_p5 }
 0x11b   : > { %2964 = shalt.err (!%p2961_p10)
}
 0x11c   : > { %s3822_s20 = smov 8   ;;  %s2965_s28 = scalar_lea.hbm %s3789_s12, 16 }
 0x11d   : > { %2523 = dma.hbm_to_vmem [thread:$0]  (!%p3281_p6), %s3787_s10, 8192, %s489_s26, [#allocation18], %s3820_s22, %s3820_s22, %s3822_s20  }
 0x11e   : > { %p2966_p1 = scmp.ne.s32.totalorder %s3789_s12, %s2965_s28  ;;  %p2972_p12 = scmp.lt.u32.totalorder %s2965_s28, %s3789_s12 }
 0x120   : > { %p2968_p3 = pnand %p2966_p1, %p3297_p8 }
 0x122   : > { %p2969_p11 = pneg %p2968_p3 }
 0x124   : > { %p2974_p13 = pnand %p2972_p12, %p2969_p11 }
 0x126   : > { %2977 = shalt.err (!%p2974_p13)
}
 0x127   : > { %s2978_s26 = scalar_lea.vmem %s3495_s19, 16  ;;  %s2985_s14 = scalar_lea.vmem %s3495_s19, 32 }
 0x128   : > { %p2979_p0 = scmp.ne.s32.totalorder %s3495_s19, %s2978_s26  ;;  %p2986_p7 = scmp.lt.s32.totalorder %s3495_s19, %s3495_s19 }
 0x129   : > { %p2987_p9 = scmp.lt.s32.totalorder %s2985_s14, %s2978_s26 }
 0x12a   : > { %p2981_p2 = pnand %p2979_p0, %p3297_p8 }
 0x12b   : > { %p2988_p4 = por %p2987_p9, %p2986_p7 }
 0x12c   : > { %p2982_p5 = pneg %p2981_p2 }
 0x12e   : > { %p2989_p10 = pnand %p2988_p4, %p2982_p5 }
 0x130   : > { %2992 = shalt.err (!%p2989_p10)
}
 0x131   : > { %2529 = dma.hbm_to_vmem [thread:$0]  (!%p3281_p6), %s3789_s12, 16, %s3495_s19, [#allocation21]  }
 0x132   : > { %s3165_s1 = smov [#allocation23]   ;;  %s2993_s27 = scalar_lea.hbm %s3790_s13, 16 }
 0x133   : > { %s524_s30 = sshll.u32 %s3165_s1, 4  ;;  %p2994_p1 = scmp.ne.s32.totalorder %s3790_s13, %s2993_s27  ;;  %s525_s30 = int_to_ptr.vmem [resolvable:$true] %s524_s30 }
 0x134   : > { %p3000_p12 = scmp.lt.u32.totalorder %s2993_s27, %s3790_s13 }
 0x135   : > { %p2996_p3 = pnand %p2994_p1, %p3297_p8 }
 0x137   : > { %p2997_p11 = pneg %p2996_p3 }
 0x139   : > { %p3002_p13 = pnand %p3000_p12, %p2997_p11 }
 0x13b   : > { %3005 = shalt.err (!%p3002_p13)
}
 0x13c   : > { %s3006_s19 = scalar_lea.vmem %s525_s30, 16  ;;  %s3013_s14 = scalar_lea.vmem %s525_s30, 32 }
 0x13d   : > { %p3007_p0 = scmp.ne.s32.totalorder %s525_s30, %s3006_s19  ;;  %p3014_p7 = scmp.lt.s32.totalorder %s525_s30, %s525_s30 }
 0x13e   : > { %p3015_p9 = scmp.lt.s32.totalorder %s3013_s14, %s3006_s19 }
 0x13f   : > { %p3009_p2 = pnand %p3007_p0, %p3297_p8 }
 0x140   : > { %p3016_p4 = por %p3015_p9, %p3014_p7 }
 0x141   : > { %p3010_p5 = pneg %p3009_p2 }
 0x143   : > { %p3017_p10 = pnand %p3016_p4, %p3010_p5 }
 0x145   : > { %3020 = shalt.err (!%p3017_p10)
}
 0x146   : > { %s3823_s1 = sld [smem:[#allocation36_spill]]  ;;  %s3824_s21 = sld [smem:[#allocation35_spill]] }
 0x147   : > { %s3825_s25 = sld [smem:[#allocation37_spill]]  ;;  %s1930_s28 = sadd.s32 4294967294, %s3145_s16  }
 0x148   : > { %2532 = dma.hbm_to_vmem [thread:$0]  (!%p3281_p6), %s3790_s13, 16, %s525_s30, [#allocation24]  }
 0x149   : > { %s3562_s23 = sadd.s32 1, %s3145_s16   ;;  %s44_s27 = sadd.s32 1, %s3141_s15 }
 0x14a   : > { %s41_s0 = ssub.s32 %s3145_s16, %s3562_s23  ;;  %p52_p3 = scmp.eq.s32.totalorder %s3145_s16, 0 }
 0x14b   : > { %p42_p1 = scmp.eq.s32.totalorder %s41_s0, 0  ;;  %p360_p5 = scmp.eq.s32.totalorder %s1930_s28, 1 }
 0x14c   : > { %p51_p8 = scmp.ne.s32.totalorder %s3141_s15, %s3823_s1  ;;  %p57_p11 = scmp.ne.s32.totalorder %s3823_s1, %s3824_s21 }
 0x14d   : > { %p354_p12 = scmp.eq.s32.totalorder %s3825_s25, 1  ;;  %p3826_p0 = scmp.eq.s32.totalorder %s3825_s25, 0 }
 0x14e   : > { %s3574_s18 = scalar_select %p42_p1, %s3141_s15, %s44_s27  }
 0x14f   : > { %p53_p13 = por %p52_p3, %p51_p8  ;;  %p3578_p2 = por %p3826_p0, %p57_p11 }
 0x150   : > { %p3582_p6 = por %p354_p12, %p51_p8  ;;  %p2554_p7 = scmp.lt.s32.totalorder %s3145_s16, 2 }
 0x151   : > { %s535_s26 = sand.u32 1, %s3141_s15   ;;  %p3588_p9 = por %p360_p5, %p57_p11 }
 0x152   : > { %s3828_s30 = scalar_select %p3582_p6, 1, 0 }
 0x153   : > { %s3829_s19 = scalar_select %p3588_p9, 1, 0 }
 0x154   : > { %s1946_s14 = sshll.u32 %s535_s26, 4  ;;  %s1975_s24 = sshll.u32 %s3145_s16, 8 }
 0x155   : > { %s3830_s21 = sld [smem:[#allocation39_spill]]  ;;  %s539_s27 = scalar_lea.vmem [#allocation2], %s1946_s14 }
 0x156   : > { %s546_s0 = sshll.u32 %s539_s27, 4  ;;  %p3598_p4 = pnand %p2554_p7, %p53_p13  ;;  %s3602_s0 = int_to_ptr.vmem [resolvable:$true] %s546_s0 }
 0x157   : > { %s3604_s2 = scalar_lea.sflag [#allocation3], %s535_s26 }
 0x158   : > { %p3023_p8 = pneg %p3598_p4 }
 0x15b   : > { %s3596_s25 = scalar_lea.hbm %s3830_s21, %s1975_s24  ;;  %s3026_s17 = scalar_lea.hbm %s3830_s21, 512 }
 0x15c   : > { %s3021_s3 = scalar_lea.hbm %s3596_s25, 256  ;;  %p3027_p11 = scmp.lt.u32.totalorder %s3596_s25, %s3830_s21 }
 0x15d   : > { %p3022_p10 = scmp.ne.s32.totalorder %s3596_s25, %s3021_s3  ;;  %p3028_p12 = scmp.lt.u32.totalorder %s3026_s17, %s3021_s3 }
 0x15e   : > { %p3030_p0 = scmp.lt.u32.totalorder %s3021_s3, %s3596_s25 }
 0x15f   : > { %p3024_p1 = pnand %p3023_p8, %p3022_p10  ;;  %p3029_p13 = por %p3028_p12, %p3027_p11 }
 0x161   : > { %p3025_p3 = pneg %p3024_p1  ;;  %p3031_p5 = por %p3030_p0, %p3029_p13 }
 0x163   : > { %p3032_p7 = pnand %p3031_p5, %p3025_p3 }
 0x165   : > { %3035 = shalt.err (!%p3032_p7)
}
 0x166   : > { %s3036_s26 = scalar_lea.vmem %s3602_s0, 256  ;;  %s3166_s14 = smov [#allocation2]  }
 0x167   : > { %p3037_p10 = scmp.ne.s32.totalorder %s3602_s0, %s3036_s26  ;;  %s3041_s24 = sshll.u32 %s3166_s14, 4  ;;  %s3042_s24 = int_to_ptr.vmem [resolvable:$false] %s3041_s24 }
 0x168   : > { %s3043_s1 = scalar_lea.vmem %s3042_s24, 512  ;;  %p3044_p6 = scmp.lt.s32.totalorder %s3602_s0, %s3042_s24 }
 0x169   : > { %p3039_p1 = pnand %p3037_p10, %p3023_p8  ;;  %p3045_p11 = scmp.lt.s32.totalorder %s3043_s1, %s3036_s26 }
 0x16b   : > { %p3040_p9 = pneg %p3039_p1  ;;  %p3046_p12 = por %p3045_p11, %p3044_p6 }
 0x16d   : > { %p3047_p13 = pnand %p3046_p12, %p3040_p9 }
 0x16f   : > { %3050 = shalt.err (!%p3047_p13)
}
 0x170   : > { %2536 = dma.hbm_to_vmem [thread:$0]  (!%p3598_p4), %s3596_s25, 256, %s3602_s0, %s3604_s2, %s3820_s22, %s3820_s22, %s3822_s20  }
 0x171   : > { %s3832_s3 = sld [smem:[#allocation38_spill]] }
 0x177   : > { %p3833_p8 = scmp.ne.s32.totalorder %s3832_s3, 0 }
 0x178   : > { %s3834_s17 = sld [smem:[#allocation36_spill]] (!%p3833_p8) }
 0x179   : > { %558 = sbr.rel (%p3833_p8) target bundleno = 2382 (0x94e), region = 76 }
 0x17e   : > { %s3638_s27 = sand.u32 (!%p3833_p8), 1, %s3834_s17  }
 0x17f   : > { %s1950_s26 = sshll.u32 (!%p3833_p8), %s3638_s27, 4  ;;  %s561_s14 = scalar_lea.sflag (!%p3833_p8), [#allocation3], %s3638_s27 }
 0x180   : > { %s3642_s24 = scalar_lea.vmem [#allocation2], %s1950_s26 }
 0x181   : > { %3096 = dma.done.wait (%p3578_p2), %s561_s14, 256  }
 0x182   : > { %3098 = vsyncadd (%p3578_p2), %s561_s14, 4294967040  ;;  %s3835_s28 = sld [smem:[#allocation37_spill]] }
 0x188   : > { %p3836_p6 = scmp.eq.s32.totalorder %s3835_s28, 0 }
 0x18a   : > { %3100 = dma.done.wait (%p3836_p6), [#allocation6], 2064   ;;  %p3837_p9 = pmov %p3836_p6 }
 0x18b   : > { %p3838_p4 = pmov %p3836_p6 }
 0x18c   : > { %3102 = vsyncadd (%p3837_p9), [#allocation6], 4294965232 }
 0x18d   : > { %3104 = dma.done.wait (%p3838_p4), [#allocation9], 8192   ;;  %p3839_p3 = pmov %p3838_p4 }
 0x18f   : > { %3106 = vsyncadd (%p3839_p3), [#allocation9], 4294959104  ;;  %p3840_p0 = pmov %p3839_p3 }
 0x191   : > { %3108 = dma.done.wait (%p3840_p0), [#allocation12], 4112   ;;  %p3841_p5 = pmov %p3840_p0 }
 0x192   : > { %p3842_p2 = pmov %p3840_p0 }
 0x193   : > { %3110 = vsyncadd (%p3841_p5), [#allocation12], 4294963184 }
 0x194   : > { %3112 = dma.done.wait (%p3842_p2), [#allocation15], 8208   ;;  %p3843_p7 = pmov %p3840_p0 }
 0x195   : > { %p3844_p10 = pmov %p3840_p0 }
 0x196   : > { %3114 = vsyncadd (%p3843_p7), [#allocation15], 4294959088 }
 0x197   : > { %3116 = dma.done.wait (%p3844_p10), [#allocation18], 8256   ;;  %p3845_p1 = pmov %p3840_p0 }
 0x198   : > { %p3846_p11 = pmov %p3840_p0 }
 0x199   : > { %3118 = vsyncadd (%p3845_p1), [#allocation18], 4294959040 }
 0x19a   : > { %3120 = dma.done.wait (%p3846_p11), [#allocation21], 32   ;;  %p3847_p12 = pmov %p3840_p0 }
 0x19b   : > { %p3848_p13 = pmov %p3840_p0 }
 0x19c   : > { %3122 = vsyncadd (%p3847_p12), [#allocation21], 4294967264 }
 0x19d   : > { %3124 = dma.done.wait (%p3848_p13), [#allocation24], 16   ;;  %p3849_p8 = pmov %p3840_p0 }
 0x19e   : > { %v664_v0 = vld [vmem:[#allocation5] sm:$0xff]  ;;  %v665_v1 = vld [vmem:[#allocation5 + $0x8] sm:$0xff]  ;;  %v666_v2 = vld [vmem:[#allocation5 + $0x10] sm:$0xff]  ;;  %s1964_s2 = sshll.u32 %s3638_s27, 1  ;;  %s1972_s22 = sshll.u32 %s3835_s28, 5  ;;  %vm1718_vm0 = vcmask 1041409  }
 0x19f   : > { %3126 = vsyncadd (%p3849_p8), [#allocation24], 4294967280  ;;  %v2181_v3 = vpack.c.bf16 %v665_v1, %v664_v0  ;;  %v667_v4 = vld [vmem:[#allocation5 + $0x18] sm:$0xff]  ;;  %v668_v6 = vld [vmem:[#allocation5 + $0x20] sm:$0xff]  ;;  %s660_s20 = scalar_lea.vmem [#allocation25], %s1964_s2  ;;  %s3850_s1 = sld [smem:[#allocation43_spill]] }
 0x1a0   : > { %v2185_v5 = vpack.c.bf16 %v667_v4, %v666_v2  ;;  %v669_v7 = vld [vmem:[#allocation5 + $0x28] sm:$0xff]  ;;  %v670_v9 = vld [vmem:[#allocation5 + $0x30] sm:$0xff]  ;;  %v671_v10 = vld [vmem:[#allocation5 + $0x38] sm:$0xff]  ;;  %s1736_s29 = sshll.u32 %s660_s20, 4  ;;  %s1723_s17 = scalar_lea.sflag [#allocation4], %s3638_s27  ;;  %s3735_s29 = int_to_ptr.vmem [resolvable:$true] %s1736_s29 }
 0x1a1   : > { %2182 = vmatprep.subr.bf16.mxu0 %v2181_v3  ;;  %v2189_v8 = vpack.c.bf16 %v669_v7, %v668_v6  ;;  %v3677_v11 = vld [vmem:[%s3642_s24] sm:$0xff]  ;;  %v2193_v24 = vpack.c.bf16 %v671_v10, %v670_v9  ;;  %v673_v27 = vld [vmem:[#allocation5 + $0x48] sm:$0xff]  ;;  %v675_v36 = vld [vmem:[#allocation5 + $0x58] sm:$0xff]  ;;  %v3167_v10 = vmov 0.0   ;;  %s3051_s26 = scalar_lea.vmem %s3735_s29, 32  ;;  %p3851_p9 = scmp.ne.s32.totalorder %s3828_s30, 0 }
 0x1a2   : > { %2184 = vmatpush3.bf16.msra.mxu0 %v2181_v3  ;;  %2178 = vmatprep.mubr.f32.mxu0 %v3677_v11  ;;  %v763_v12 = vld [vmem:[#allocation8 + $0x8] sm:$0xff]  ;;  %v765_v13 = vld [vmem:[#allocation8 + $0x18] sm:$0xff]  ;;  %v762_v14 = vld [vmem:[#allocation8] sm:$0xff]  ;;  %p3052_p6 = scmp.ne.s32.totalorder %s3735_s29, %s3051_s26  ;;  %s3168_s14 = smov [#allocation25]  }
 0x1a3   : > { %2186 = vmatprep.subr.bf16.mxu0 %v2185_v5  ;;  %v2213_v15 = vpack.c.bf16 %v765_v13, %v763_v12  ;;  %v764_v16 = vld [vmem:[#allocation8 + $0x10] sm:$0xff]  ;;  %v767_v17 = vld [vmem:[#allocation8 + $0x28] sm:$0xff]  ;;  %v769_v18 = vld [vmem:[#allocation8 + $0x38] sm:$0xff]  ;;  %858 = vmatprep.mubr.f32.mxu1 %v3167_v10 }
 0x1a4   : > { %v2215_v19 = vpack.c.bf16 %v764_v16, %v762_v14  ;;  %v2217_v20 = vpack.c.bf16 %v769_v18, %v767_v17  ;;  %v766_v21 = vld [vmem:[#allocation8 + $0x20] sm:$0xff]  ;;  %v768_v22 = vld [vmem:[#allocation8 + $0x30] sm:$0xff]  ;;  %v771_v23 = vld [vmem:[#allocation8 + $0x48] sm:$0xff]  ;;  %p3053_p4 = pnand %p3052_p6, %p3851_p9 }
 0x1a5   : > { %2214 = vmatprep.subr.bf16.mxu1 %v2213_v15  ;;  %v773_v25 = vld [vmem:[#allocation8 + $0x58] sm:$0xff]  ;;  %v2219_v28 = vpack.c.bf16 %v768_v22, %v766_v21  ;;  %v770_v30 = vld [vmem:[#allocation8 + $0x40] sm:$0xff]  ;;  %v772_v31 = vld [vmem:[#allocation8 + $0x50] sm:$0xff]  ;;  %s3733_s3 = scalar_lea.hbm %s3850_s1, %s1972_s22 }
 0x1a6   : > { %2188 = vmatpush3.bf16.msra.mxu0 %v2185_v5  ;;  %v672_v26 = vld [vmem:[#allocation5 + $0x40] sm:$0xff]  ;;  %2216 = vmatpush1.bf16.msra.mxu1 %v2215_v19  ;;  %v2221_v29 = vpack.c.bf16 %v773_v25, %v771_v23  ;;  %v775_v32 = vld [vmem:[#allocation8 + $0x68] sm:$0xff]  ;;  %v2223_v37 = vpack.c.bf16 %v772_v31, %v770_v30  ;;  %v776_v40 = vld [vmem:[#allocation8 + $0x70] sm:$0xff]  ;;  %p3054_p3 = pneg %p3053_p4 }
 0x1a7   : > { %2190 = vmatprep.subr.bf16.mxu0 %v2189_v8  ;;  %2218 = vmatprep.subr.bf16.mxu1 %v2217_v20  ;;  %v777_v33 = vld [vmem:[#allocation8 + $0x78] sm:$0xff]  ;;  %v2197_v34 = vpack.c.bf16 %v673_v27, %v672_v26  ;;  %v674_v35 = vld [vmem:[#allocation5 + $0x50] sm:$0xff]  ;;  %v774_v39 = vld [vmem:[#allocation8 + $0x60] sm:$0xff] }
 0x1a8   : > { %v2225_v38 = vpack.c.bf16 %v777_v33, %v775_v32  ;;  %v779_v41 = vld [vmem:[#allocation8 + $0x88] sm:$0xff]  ;;  %v781_v42 = vld [vmem:[#allocation8 + $0x98] sm:$0xff]  ;;  %v2201_v43 = vpack.c.bf16 %v675_v36, %v674_v35  ;;  %v2227_v46 = vpack.c.bf16 %v776_v40, %v774_v39  ;;  %v778_v48 = vld [vmem:[#allocation8 + $0x80] sm:$0xff] }
 0x1a9   : > { %v676_v44 = vld [vmem:[#allocation5 + $0x60] sm:$0xff]  ;;  %v677_v45 = vld [vmem:[#allocation5 + $0x68] sm:$0xff]  ;;  %v2229_v47 = vpack.c.bf16 %v781_v42, %v779_v41  ;;  %v780_v49 = vld [vmem:[#allocation8 + $0x90] sm:$0xff] }
 0x1aa   : > { %2192 = vmatpush3.bf16.msra.mxu0 %v2189_v8  ;;  %2220 = vmatpush1.bf16.msra.mxu1 %v2219_v28  ;;  %v783_v50 = vld [vmem:[#allocation8 + $0xa8] sm:$0xff]  ;;  %v785_v51 = vld [vmem:[#allocation8 + $0xb8] sm:$0xff]  ;;  %v2205_v52 = vpack.c.bf16 %v677_v45, %v676_v44  ;;  %v2231_v55 = vpack.c.bf16 %v780_v49, %v778_v48  ;;  %v782_v57 = vld [vmem:[#allocation8 + $0xa0] sm:$0xff] }
 0x1ab   : > { %2194 = vmatprep.subr.bf16.mxu0 %v2193_v24  ;;  %2222 = vmatprep.subr.bf16.mxu1 %v2221_v29  ;;  %v678_v53 = vld [vmem:[#allocation5 + $0x70] sm:$0xff]  ;;  %v679_v54 = vld [vmem:[#allocation5 + $0x78] sm:$0xff]  ;;  %v2233_v56 = vpack.c.bf16 %v785_v51, %v783_v50  ;;  %v786_v0 = vld [vmem:[#allocation8 + $0xc0] sm:$0xff] }
 0x1ac   : > { %v784_v58 = vld [vmem:[#allocation8 + $0xb0] sm:$0xff]  ;;  %v787_v59 = vld [vmem:[#allocation8 + $0xc8] sm:$0xff]  ;;  %v789_v60 = vld [vmem:[#allocation8 + $0xd8] sm:$0xff]  ;;  %v2209_v61 = vpack.c.bf16 %v679_v54, %v678_v53 }
 0x1ad   : > { %v2235_v62 = vpack.c.bf16 %v784_v58, %v782_v57  ;;  %v2237_v63 = vpack.c.bf16 %v789_v60, %v787_v59  ;;  %v788_v1 = vld [vmem:[#allocation8 + $0xd0] sm:$0xff]  ;;  %v791_v4 = vld [vmem:[#allocation8 + $0xe8] sm:$0xff]  ;;  %v793_v5 = vld [vmem:[#allocation8 + $0xf8] sm:$0xff] }
 0x1ae   : > { %2196 = vmatpush3.bf16.msra.mxu0 %v2193_v24  ;;  %2224 = vmatpush1.bf16.msra.mxu1 %v2223_v37  ;;  %v2239_v2 = vpack.c.bf16 %v788_v1, %v786_v0  ;;  %v3681_v3 = vld [vmem:[%s3642_s24 + $0x8] sm:$0xff]  ;;  %v2241_v6 = vpack.c.bf16 %v793_v5, %v791_v4  ;;  %v1965_v12 = vld [vmem:[#allocation7] ss:$0 sm:$0xff]  ;;  %s3055_s24 = sshll.u32 %s3168_s14, 4  ;;  %s3056_s24 = int_to_ptr.vmem [resolvable:$false] %s3055_s24 }
 0x1af   : > { %2198 = vmatprep.subr.bf16.mxu0 %v2197_v34  ;;  %2226 = vmatprep.subr.bf16.mxu1 %v2225_v38  ;;  %v790_v7 = vld [vmem:[#allocation8 + $0xe0] sm:$0xff]  ;;  %v792_v8 = vld [vmem:[#allocation8 + $0xf0] sm:$0xff]  ;;  %v914_v18 = vld [vmem:[#allocation10 + $0x88] sm:$0xff]  ;;  %s3057_s28 = scalar_lea.vmem %s3056_s24, 64  ;;  %p3058_p0 = scmp.lt.s32.totalorder %s3735_s29, %s3056_s24 }
 0x1b0   : > { %v2243_v9 = vpack.c.bf16 %v792_v8, %v790_v7  ;;  %v913_v17 = vld [vmem:[#allocation10 + $0x80] sm:$0xff]  ;;  %v1021_v21 = vld [vmem:[#allocation11 + $0x88] sm:$0xff]  ;;  %v915_v28 = vld [vmem:[#allocation10 + $0x90] sm:$0xff]  ;;  %p3059_p5 = scmp.lt.s32.totalorder %s3057_s28, %s3051_s26 }
 0x1b1   : > { %v1020_v19 = vld [vmem:[#allocation11 + $0x80] sm:$0xff]  ;;  %v2245_v20 = vpack.c.bf16 %v914_v18, %v913_v17  ;;  %v898_v23 = vld [vmem:[#allocation10 + $0x8] sm:$0xff]  ;;  %v916_v30 = vld [vmem:[#allocation10 + $0x98] sm:$0xff] }
 0x1b2   : > { %2200 = vmatpush3.bf16.msra.mxu0 %v2197_v34  ;;  %2228 = vmatpush1.bf16.msra.mxu1 %v2227_v46  ;;  %v897_v22 = vld [vmem:[#allocation10] sm:$0xff]  ;;  %v2277_v24 = vpack.c.bf16 %v1021_v21, %v1020_v19  ;;  %v1005_v27 = vld [vmem:[#allocation11 + $0x8] sm:$0xff]  ;;  %v1022_v31 = vld [vmem:[#allocation11 + $0x90] sm:$0xff]  ;;  %v2249_v33 = vpack.c.bf16 %v916_v30, %v915_v28  ;;  %p3060_p2 = por %p3059_p5, %p3058_p0 }
 0x1b3   : > { %2202 = vmatprep.subr.bf16.mxu0 %v2201_v43  ;;  %2230 = vmatprep.subr.bf16.mxu1 %v2229_v47  ;;  %v2247_v25 = vpack.c.bf16 %v898_v23, %v897_v22  ;;  %v1004_v26 = vld [vmem:[#allocation11] sm:$0xff]  ;;  %v1023_v32 = vld [vmem:[#allocation11 + $0x98] sm:$0xff]  ;;  %v899_v35 = vld [vmem:[#allocation10 + $0x10] sm:$0xff] }
 0x1b4   : > { %v2279_v29 = vpack.c.bf16 %v1005_v27, %v1004_v26  ;;  %v2281_v34 = vpack.c.bf16 %v1023_v32, %v1022_v31  ;;  %v900_v36 = vld [vmem:[#allocation10 + $0x18] sm:$0xff]  ;;  %v1006_v37 = vld [vmem:[#allocation11 + $0x10] sm:$0xff]  ;;  %v917_v40 = vld [vmem:[#allocation10 + $0xa0] sm:$0xff]  ;;  %p3061_p7 = pnand %p3060_p2, %p3054_p3 }
 0x1b5   : > { %v2251_v38 = vpack.c.bf16 %v900_v36, %v899_v35  ;;  %v1007_v39 = vld [vmem:[#allocation11 + $0x18] sm:$0xff]  ;;  %v918_v41 = vld [vmem:[#allocation10 + $0xa8] sm:$0xff]  ;;  %v1024_v44 = vld [vmem:[#allocation11 + $0xa0] sm:$0xff] }
 0x1b6   : > { %2204 = vmatpush3.bf16.msra.mxu0 %v2201_v43  ;;  %2232 = vmatpush1.bf16.msra.mxu1 %v2231_v55  ;;  %v2283_v42 = vpack.c.bf16 %v1007_v39, %v1006_v37  ;;  %v2253_v43 = vpack.c.bf16 %v918_v41, %v917_v40  ;;  %v1025_v45 = vld [vmem:[#allocation11 + $0xa8] sm:$0xff]  ;;  %v901_v46 = vld [vmem:[#allocation10 + $0x20] sm:$0xff]  ;;  %v920_v53 = vld [vmem:[#allocation10 + $0xb8] sm:$0xff] }
 0x1b7   : > { %2206 = vmatprep.subr.bf16.mxu0 %v2205_v52  ;;  %2234 = vmatprep.subr.bf16.mxu1 %v2233_v56  ;;  %v2285_v47 = vpack.c.bf16 %v1025_v45, %v1024_v44  ;;  %v902_v48 = vld [vmem:[#allocation10 + $0x28] sm:$0xff]  ;;  %v1008_v49 = vld [vmem:[#allocation11 + $0x20] sm:$0xff]  ;;  %v1026_v54 = vld [vmem:[#allocation11 + $0xb0] sm:$0xff] }
 0x1b8   : > { %v1009_v50 = vld [vmem:[#allocation11 + $0x28] sm:$0xff]  ;;  %v2255_v51 = vpack.c.bf16 %v902_v48, %v901_v46  ;;  %v1027_v57 = vld [vmem:[#allocation11 + $0xb8] sm:$0xff]  ;;  %v903_v58 = vld [vmem:[#allocation10 + $0x30] sm:$0xff] }
 0x1b9   : > { %v2287_v55 = vpack.c.bf16 %v1009_v50, %v1008_v49  ;;  %v904_v59 = vld [vmem:[#allocation10 + $0x38] sm:$0xff]  ;;  %v2289_v60 = vpack.c.bf16 %v1027_v57, %v1026_v54  ;;  %v1029_v18 = vld [vmem:[#allocation11 + $0xc8] sm:$0xff]  ;;  %v905_v19 = vld [vmem:[#allocation10 + $0x40] sm:$0xff] }
 0x1ba   : > { %2208 = vmatpush3.bf16.msra.mxu0 %v2205_v52  ;;  %2236 = vmatpush1.bf16.msra.mxu1 %v2235_v62  ;;  %v919_v52 = vld [vmem:[#allocation10 + $0xb0] sm:$0xff]  ;;  %v1011_v62 = vld [vmem:[#allocation11 + $0x38] sm:$0xff]  ;;  %v1012_v23 = vld [vmem:[#allocation11 + $0x40] sm:$0xff] }
 0x1bb   : > { %2210 = vmatprep.subr.bf16.mxu0 %v2209_v61  ;;  %2238 = vmatprep.subr.bf16.mxu1 %v2237_v63  ;;  %v2257_v56 = vpack.c.bf16 %v920_v53, %v919_v52  ;;  %v2259_v63 = vpack.c.bf16 %v904_v59, %v903_v58  ;;  %v923_v26 = vld [vmem:[#allocation10 + $0xd0] sm:$0xff]  ;;  %v924_v27 = vld [vmem:[#allocation10 + $0xd8] sm:$0xff]  ;;  %v926_v39 = vld [vmem:[#allocation10 + $0xe8] sm:$0xff] }
 0x1bc   : > { %v1030_v28 = vld [vmem:[#allocation11 + $0xd0] sm:$0xff]  ;;  %v1031_v30 = vld [vmem:[#allocation11 + $0xd8] sm:$0xff]  ;;  %v1032_v40 = vld [vmem:[#allocation11 + $0xe0] sm:$0xff] }
 0x1bd   : > { %v907_v31 = vld [vmem:[#allocation10 + $0x50] sm:$0xff]  ;;  %v908_v32 = vld [vmem:[#allocation10 + $0x58] sm:$0xff]  ;;  %v910_v44 = vld [vmem:[#allocation10 + $0x68] sm:$0xff] }
 0x1be   : > { %2212 = vmatpush3.bf16.msra.mxu0 %v2209_v61  ;;  %2240 = vmatpush1.bf16.msra.mxu1 %v2239_v2  ;;  %v1010_v61 = vld [vmem:[#allocation11 + $0x30] sm:$0xff]  ;;  %v1015_v36 = vld [vmem:[#allocation11 + $0x58] sm:$0xff]  ;;  %v1017_v48 = vld [vmem:[#allocation11 + $0x68] sm:$0xff] }
 0x1bf   : > { %2242 = vmatprep.subr.bf16.mxu1 %v2241_v6  ;;  %2246 = vmatprep.subr.bf16.mxu0 %v2245_v20  ;;  %v2291_v0 = vpack.c.bf16 %v1011_v62, %v1010_v61  ;;  %v906_v20 = vld [vmem:[#allocation10 + $0x48] sm:$0xff]  ;;  %v1014_v35 = vld [vmem:[#allocation11 + $0x50] sm:$0xff]  ;;  %v1035_v54 = vld [vmem:[#allocation11 + $0xf8] sm:$0xff] }
 0x1c0   : > { %v2263_v22 = vpack.c.bf16 %v906_v20, %v905_v19  ;;  %v2299_v37 = vpack.c.bf16 %v1015_v36, %v1014_v35  ;;  %v927_v50 = vld [vmem:[#allocation10 + $0xf0] sm:$0xff] }
 0x1c1   : > { %2179 = vmatmul.mubr.f32.vlgmr.msra.gmra.mrb[0].mxu0 %v3681_v3  ;;  %v1034_v52 = vld [vmem:[#allocation11 + $0xf0] sm:$0xff] }
 0x1c2   : > { %2244 = vmatpush1.bf16.msra.mxu1 %v2243_v9  ;;  %2248 = vmatpush3.bf16.msra.mxu0 %v2247_v25  ;;  %v2305_v57 = vpack.c.bf16 %v1035_v54, %v1034_v52  ;;  %v1018_v59 = vld [vmem:[#allocation11 + $0x70] sm:$0xff]  ;;  %v1170_v54 = vld [vmem:[#allocation16 + $0x60] sm:$0xff] }
 0x1c3   : > { %2278 = vmatprep.subr.bf16.mxu1 %v2277_v24  ;;  %2250 = vmatprep.subr.bf16.mxu0 %v2249_v33  ;;  %v1013_v24 = vld [vmem:[#allocation11 + $0x48] sm:$0xff]  ;;  %v2297_v33 = vpack.c.bf16 %v1031_v30, %v1030_v28 }
 0x1c4   : > { %v2295_v25 = vpack.c.bf16 %v1013_v24, %v1012_v23 }
 0x1c6   : > { %2252 = vmatpush3.bf16.msra.mxu0 %v2251_v38  ;;  %v925_v38 = vld [vmem:[#allocation10 + $0xe0] sm:$0xff] }
 0x1c7   : > { %2254 = vmatprep.subr.bf16.mxu0 %v2253_v43  ;;  %v2269_v41 = vpack.c.bf16 %v926_v39, %v925_v38  ;;  %v909_v43 = vld [vmem:[#allocation10 + $0x60] sm:$0xff]  ;;  %v1163_v38 = vld [vmem:[#allocation16 + $0x28] sm:$0xff] }
 0x1c8   : > { %v2271_v46 = vpack.c.bf16 %v910_v44, %v909_v43  ;;  %v1161_v39 = vld [vmem:[#allocation16 + $0x18] sm:$0xff]  ;;  %v1162_v43 = vld [vmem:[#allocation16 + $0x20] sm:$0xff] }
 0x1ca   : > { %2256 = vmatpush3.bf16.msra.mxu0 %v2255_v51  ;;  %v928_v51 = vld [vmem:[#allocation10 + $0xf8] sm:$0xff] }
 0x1cb   : > { %2258 = vmatprep.subr.bf16.mxu0 %v2257_v56  ;;  %v2273_v53 = vpack.c.bf16 %v928_v51, %v927_v50  ;;  %v912_v56 = vld [vmem:[#allocation10 + $0x78] sm:$0xff] }
 0x1cc   : > { %v1169_v50 = vld [vmem:[#allocation16 + $0x58] sm:$0xff] }
 0x1cd   : > { %v1173_v51 = vld [vmem:[#allocation16 + $0x78] sm:$0xff] }
 0x1ce   : > { %2260 = vmatpush3.bf16.msra.mxu0 %v2259_v63  ;;  %v2345_v52 = vpack.c.bf16 %v1173_v51, %v1169_v50  ;;  %v1200_v50 = vld [vmem:[#allocation16 + $0x150] sm:$0xff] }
 0x1cf   : > { %v1204_v51 = vld [vmem:[#allocation16 + $0x170] sm:$0xff] }
 0x294   : > { %v2180_v13 = vpop.f32.mrb[0].mxu0 }
 0x295   : > { %v753_v14 = vpop.f32.mrb[1].mxu0  ;;  %v759_v16 = vadd.f32 %v2180_v13, %v1965_v12 }
 0x296   : > { %v754_v15 = vadd.f32 %v1965_v12, %v753_v14  ;;  %v921_v14 = vld [vmem:[#allocation10 + $0xc0] sm:$0xff] }
 0x298   : > { %859 = vmatmul.mubr.f32.vlgmr.msra.gmra.mrb[0].mxu1 %v754_v15  ;;  %v922_v15 = vld [vmem:[#allocation10 + $0xc8] sm:$0xff] }
 0x299   : > { %864 = vmatprep.mubr.f32.mxu1 %v3167_v10  ;;  %2280 = vmatpush3.bf16.msra.mxu1 %v2279_v29  ;;  %v2261_v17 = vpack.c.bf16 %v922_v15, %v921_v14  ;;  %v2265_v29 = vpack.c.bf16 %v924_v27, %v923_v26 }
 0x29a   : > { %2282 = vmatprep.subr.bf16.mxu1 %v2281_v34  ;;  %v2267_v34 = vpack.c.bf16 %v908_v32, %v907_v31 }
 0x29b   : > { %2262 = vmatprep.subr.bf16.mxu0 %v2261_v17 }
 0x29c   : > { %865 = vmatmul.mubr.f32.gmra.mrb[2].mxu1 %v759_v16  ;;  %v1028_v16 = vld [vmem:[#allocation11 + $0xc0] sm:$0xff]  ;;  %2264 = vmatpush3.bf16.msra.mxu0 %v2263_v22 }
 0x29d   : > { %2284 = vmatpush3.bf16.msra.mxu1 %v2283_v42  ;;  %v2293_v21 = vpack.c.bf16 %v1029_v18, %v1028_v16  ;;  %2266 = vmatprep.subr.bf16.mxu0 %v2265_v29  ;;  %v1033_v42 = vld [vmem:[#allocation11 + $0xe8] sm:$0xff] }
 0x29e   : > { %2286 = vmatprep.subr.bf16.mxu1 %v2285_v47  ;;  %v2301_v45 = vpack.c.bf16 %v1033_v42, %v1032_v40  ;;  %v1016_v47 = vld [vmem:[#allocation11 + $0x60] sm:$0xff] }
 0x29f   : > { %v2303_v49 = vpack.c.bf16 %v1017_v48, %v1016_v47  ;;  %v1158_v42 = vld [vmem:[#allocation16] sm:$0xff]  ;;  %v1164_v47 = vld [vmem:[#allocation16 + $0x30] sm:$0xff]  ;;  %v1167_v48 = vld [vmem:[#allocation16 + $0x48] sm:$0xff] }
 0x2a0   : > { %2268 = vmatpush3.bf16.msra.mxu0 %v2267_v34 }
 0x2a1   : > { %2288 = vmatpush3.bf16.msra.mxu1 %v2287_v55  ;;  %2270 = vmatprep.subr.bf16.mxu0 %v2269_v41  ;;  %v911_v55 = vld [vmem:[#allocation10 + $0x70] sm:$0xff]  ;;  %v1165_v41 = vld [vmem:[#allocation16 + $0x38] sm:$0xff] }
 0x2a2   : > { %2290 = vmatprep.subr.bf16.mxu1 %v2289_v60  ;;  %v2275_v58 = vpack.c.bf16 %v912_v56, %v911_v55  ;;  %v1019_v60 = vld [vmem:[#allocation11 + $0x78] sm:$0xff]  ;;  %v2341_v44 = vpack.c.bf16 %v1165_v41, %v1161_v39 }
 0x2a3   : > { %v2307_v61 = vpack.c.bf16 %v1019_v60, %v1018_v59  ;;  %v1168_v55 = vld [vmem:[#allocation16 + $0x50] sm:$0xff]  ;;  %v1179_v59 = vld [vmem:[#allocation16 + $0xa8] sm:$0xff] }
 0x2a4   : > { %2272 = vmatpush3.bf16.msra.mxu0 %v2271_v46  ;;  %v1160_v46 = vld [vmem:[#allocation16 + $0x10] sm:$0xff] }
 0x2a5   : > { %2292 = vmatpush3.bf16.msra.mxu1 %v2291_v0  ;;  %2274 = vmatprep.subr.bf16.mxu0 %v2273_v53  ;;  %v1166_v53 = vld [vmem:[#allocation16 + $0x40] sm:$0xff]  ;;  %v1192_v39 = vld [vmem:[#allocation16 + $0x110] sm:$0xff] }
 0x2a6   : > { %2294 = vmatprep.subr.bf16.mxu1 %v2293_v21  ;;  %v2315_v56 = vpack.c.bf16 %v1170_v54, %v1166_v53  ;;  %v1211_v53 = vld [vmem:[#allocation16 + $0x1a8] sm:$0xff]  ;;  %v1209_v54 = vld [vmem:[#allocation16 + $0x198] sm:$0xff] }
 0x2a8   : > { %2276 = vmatpush3.bf16.msra.mxu0 %v2275_v58  ;;  %v1175_v58 = vld [vmem:[#allocation16 + $0x88] sm:$0xff] }
 0x2a9   : > { %2296 = vmatpush3.bf16.msra.mxu1 %v2295_v25 }
 0x2aa   : > { %2298 = vmatprep.subr.bf16.mxu1 %v2297_v33 }
 0x2ad   : > { %2300 = vmatpush3.bf16.msra.mxu1 %v2299_v37  ;;  %v1159_v37 = vld [vmem:[#allocation16 + $0x8] sm:$0xff] }
 0x2ae   : > { %2302 = vmatprep.subr.bf16.mxu1 %v2301_v45  ;;  %v2309_v40 = vpack.c.bf16 %v1163_v38, %v1159_v37  ;;  %v2311_v45 = vpack.c.bf16 %v1162_v43, %v1158_v42  ;;  %v1199_v42 = vld [vmem:[#allocation16 + $0x148] sm:$0xff] }
 0x2af   : > { %v1203_v43 = vld [vmem:[#allocation16 + $0x168] sm:$0xff] }
 0x2b0   : > { %2310 = vmatprep.subr.bf16.mxu0 %v2309_v40  ;;  %v1196_v40 = vld [vmem:[#allocation16 + $0x130] sm:$0xff] }
 0x2b1   : > { %2304 = vmatpush3.bf16.msra.mxu1 %v2303_v49  ;;  %v1171_v49 = vld [vmem:[#allocation16 + $0x68] sm:$0xff]  ;;  %v2359_v41 = vpack.c.bf16 %v1196_v40, %v1192_v39  ;;  %v1457_v39 = vld [vmem:[#allocation19 + $0x98] sm:$0xff]  ;;  %v1488_v40 = vld [vmem:[#allocation19 + $0x190] sm:$0xff] }
 0x2b2   : > { %2306 = vmatprep.subr.bf16.mxu1 %v2305_v57  ;;  %v1172_v57 = vld [vmem:[#allocation16 + $0x70] sm:$0xff] }
 0x2b3   : > { %v2347_v60 = vpack.c.bf16 %v1172_v57, %v1168_v55  ;;  %v1206_v57 = vld [vmem:[#allocation16 + $0x180] sm:$0xff] }
 0x2b5   : > { %2308 = vmatpush3.bf16.msra.mxu1 %v2307_v61  ;;  %v2317_v61 = vpack.c.bf16 %v1179_v59, %v1175_v58  ;;  %v1210_v58 = vld [vmem:[#allocation16 + $0x1a0] sm:$0xff] }
 0x2b6   : > { %2342 = vmatprep.subr.bf16.mxu1 %v2341_v44  ;;  %v1201_v44 = vld [vmem:[#allocation16 + $0x158] sm:$0xff] }
 0x36b   : > { %v860_v1 = vpop.f32.mrb[0].mxu1 }
 0x36c   : > { %v3686_v2 = vmul.f32 0.17677669, %v860_v1  ;;  %v862_v4 = vpop.f32.mrb[1].mxu1 }
 0x36d   : > { %v3688_v5 = vmul.f32 0.17677669, %v862_v4 }
 0x36f   : > { %v866_v6 = vpop.f32.mrb[2].mxu1  ;;  %v875_v7 = vmax.f32 %v3686_v2, %v3688_v5 }
 0x370   : > { %v3692_v8 = vmul.f32 0.17677669, %v866_v6  ;;  %v868_v9 = vpop.f32.mrb[3].mxu1 }
 0x371   : > { %v3694_v12 = vmul.f32 0.17677669, %v868_v9  ;;  %876 = vmax.xlane.f32.xlu0 %v875_v7 }
 0x373   : > { %v878_v13 = vmax.f32 %v3692_v8, %v3694_v12 }
 0x375   : > { %879 = vmax.xlane.f32.xlu0 %v878_v13 }
 0x3fe   : > { %v877_v62 = vpop.xlane.xlu0 %876 }
 0x3ff   : > { %v881_v63 = vsub.f32 %v3686_v2, %v877_v62  ;;  %v882_v0 = vsub.f32 %v3688_v5, %v877_v62  ;;  %v1177_v62 = vld [vmem:[#allocation16 + $0x98] sm:$0xff] }
 0x401   : > { %v885_v1 = vmax.f32 %v881_v63, -80.0  ;;  %v886_v4 = vmax.f32 %v882_v0, -80.0  ;;  %v1181_v63 = vld [vmem:[#allocation16 + $0xb8] sm:$0xff]  ;;  %v1174_v0 = vld [vmem:[#allocation16 + $0x80] sm:$0xff] }
 0x402   : > { %v880_v6 = vpop.xlane.xlu0 %879 }
 0x403   : > { %v889_v7 = vmul.f32 1.442695, %v885_v1  ;;  %v891_v9 = vmul.f32 1.442695, %v886_v4  ;;  %v883_v13 = vsub.f32 %v3692_v8, %v880_v6  ;;  %v884_v14 = vsub.f32 %v3694_v12, %v880_v6  ;;  %v1178_v4 = vld [vmem:[#allocation16 + $0xa0] sm:$0xff]  ;;  %v1176_v6 = vld [vmem:[#allocation16 + $0x90] sm:$0xff] }
 0x404   : > { %v2349_v1 = vpack.c.bf16 %v1181_v63, %v1177_v62  ;;  %v1212_v62 = vld [vmem:[#allocation16 + $0x1b0] sm:$0xff] }
 0x405   : > { %2621 = vpow2.f32 %v889_v7  ;;  %v887_v15 = vmax.f32 %v883_v13, -80.0  ;;  %v888_v16 = vmax.f32 %v884_v14, -80.0  ;;  %v1180_v7 = vld [vmem:[#allocation16 + $0xb0] sm:$0xff] }
 0x406   : > { %2623 = vpow2.f32 %v891_v9  ;;  %v2319_v9 = vpack.c.bf16 %v1178_v4, %v1174_v0  ;;  %v2351_v13 = vpack.c.bf16 %v1180_v7, %v1176_v6  ;;  %v1215_v0 = vld [vmem:[#allocation16 + $0x1c8] sm:$0xff]  ;;  %v1217_v4 = vld [vmem:[#allocation16 + $0x1d8] sm:$0xff] }
 0x407   : > { %v893_v17 = vmul.f32 1.442695, %v887_v15  ;;  %v895_v18 = vmul.f32 1.442695, %v888_v16  ;;  %v1221_v7 = vld [vmem:[#allocation16 + $0x1f8] sm:$0xff] }
 0x409   : > { %2625 = vpow2.f32 %v893_v17 }
 0x40a   : > { %2627 = vpow2.f32 %v895_v18 }
 0x40f   : > { %v2622_v2 = vpop.eup %2621 }
 0x410   : > { %v2624_v19 = vpop.eup %2623 }
 0x411   : > { %993 = vmatprep.mubr.f32.mxu0 %v2624_v19  ;;  %1100 = vmatprep.mubr.f32.mxu1 %v2624_v19 }
 0x412   : > { %994 = vmatmul.mubr.f32.vlgmr.msra.gmra.mrb[2].mxu0 %v2622_v2  ;;  %1101 = vmatmul.mubr.f32.vlgmr.msra.gmra.mrb[4].mxu1 %v2622_v2 }
 0x413   : > { %v2626_v5 = vpop.eup %2625  ;;  %2312 = vmatpush1.bf16.msra.mxu0 %v2311_v45  ;;  %v2329_v45 = vpack.c.bf16 %v1203_v43, %v1199_v42 }
 0x414   : > { %v2628_v20 = vpop.eup %2627 }
 0x415   : > { %998 = vmatprep.mubr.f32.mxu0 %v2628_v20  ;;  %1105 = vmatprep.mubr.f32.mxu1 %v2628_v20  ;;  %v1183_v20 = vld [vmem:[#allocation16 + $0xc8] sm:$0xff] }
 0x416   : > { %999 = vmatmul.mubr.f32.gmra.mrb[4].mxu0 %v2626_v5  ;;  %1106 = vmatmul.mubr.f32.gmra.mrb[6].mxu1 %v2626_v5 }
 0x417   : > { %1308 = vmatprep.mubr.f32.mxu0 %v3167_v10  ;;  %1385 = vmatprep.mubr.f32.mxu1 %v3167_v10 }
 0x4e5   : > { %v2026_v8 = vpop.f32.mrb[2].mxu0  ;;  %v2064_v12 = vpop.f32.mrb[4].mxu1 }
 0x4e6   : > { %v2027_v21 = vpop.f32.mrb[3].mxu0  ;;  %v2065_v22 = vpop.f32.mrb[5].mxu1 }
 0x4e7   : > { %v2028_v23 = vadd.f32 %v2027_v21, %v2026_v8  ;;  %v2066_v24 = vadd.f32 %v2065_v22, %v2064_v12  ;;  %v1187_v8 = vld [vmem:[#allocation16 + $0xe8] sm:$0xff]  ;;  %v1185_v12 = vld [vmem:[#allocation16 + $0xd8] sm:$0xff] }
 0x4e8   : > { %v2321_v21 = vpack.c.bf16 %v1187_v8, %v1183_v20  ;;  %v1189_v22 = vld [vmem:[#allocation16 + $0xf8] sm:$0xff]  ;;  %v1455_v20 = vld [vmem:[#allocation19 + $0x88] sm:$0xff]  ;;  %v1486_v8 = vld [vmem:[#allocation19 + $0x180] sm:$0xff] }
 0x4e9   : > { %2629 = vrcp.f32 %v2066_v24  ;;  %v2029_v25 = vpop.f32.mrb[4].mxu0  ;;  %v2067_v26 = vpop.f32.mrb[6].mxu1  ;;  %v1186_v24 = vld [vmem:[#allocation16 + $0xe0] sm:$0xff] }
 0x4ea   : > { %v2030_v27 = vpop.f32.mrb[5].mxu0  ;;  %v2068_v28 = vpop.f32.mrb[7].mxu1 }
 0x4eb   : > { %v2031_v29 = vadd.f32 %v2030_v27, %v2029_v25  ;;  %v2069_v30 = vadd.f32 %v2068_v28, %v2067_v26  ;;  %v2353_v25 = vpack.c.bf16 %v1189_v22, %v1185_v12  ;;  %v1184_v27 = vld [vmem:[#allocation16 + $0xd0] sm:$0xff] }
 0x4ec   : > { %v1188_v28 = vld [vmem:[#allocation16 + $0xf0] sm:$0xff] }
 0x4ed   : > { %2631 = vrcp.f32 %v2069_v30  ;;  %v1191_v30 = vld [vmem:[#allocation16 + $0x108] sm:$0xff] }
 0x4f3   : > { %v2630_v31 = vpop.eup %2629 }
 0x4f4   : > { %v1113_v32 = vmul.f32 %v2630_v31, %v2028_v23  ;;  %v1182_v23 = vld [vmem:[#allocation16 + $0xc0] sm:$0xff]  ;;  %v1195_v31 = vld [vmem:[#allocation16 + $0x128] sm:$0xff] }
 0x4f5   : > { %v2323_v26 = vpack.c.bf16 %v1186_v24, %v1182_v23 }
 0x4f6   : > { %v1115_v33 = vadd.f32 %v1113_v32, %v3677_v11  ;;  %v2343_v11 = vpack.c.bf16 %v1164_v47, %v1160_v46  ;;  %v1193_v32 = vld [vmem:[#allocation16 + $0x118] sm:$0xff]  ;;  %v1198_v47 = vld [vmem:[#allocation16 + $0x140] sm:$0xff] }
 0x4f7   : > { %v2632_v34 = vpop.eup %2631  ;;  %v1205_v46 = vld [vmem:[#allocation16 + $0x178] sm:$0xff] }
 0x4f8   : > { %1119 = vadd.xlane.f32.xlu1 %v1115_v33  ;;  %v1114_v35 = vmul.f32 %v2632_v34, %v2031_v29  ;;  %2344 = vmatpush1.bf16.msra.mxu1 %v2343_v11  ;;  %v2355_v29 = vpack.c.bf16 %v1188_v28, %v1184_v27  ;;  %v1197_v34 = vld [vmem:[#allocation16 + $0x138] sm:$0xff]  ;;  %v2361_v11 = vpack.c.bf16 %v1205_v46, %v1201_v44 }
 0x4f9   : > { %2346 = vmatprep.subr.bf16.mxu1 %v2345_v52  ;;  %v2357_v37 = vpack.c.bf16 %v1197_v34, %v1193_v32  ;;  %v1207_v52 = vld [vmem:[#allocation16 + $0x188] sm:$0xff]  ;;  %v1967_v32 = vld [vmem:[#allocation14] ss:$0 sm:$0xff] }
 0x4fa   : > { %v1116_v36 = vadd.f32 %v1114_v35, %v3681_v3  ;;  %v2313_v3 = vpack.c.bf16 %v1171_v49, %v1167_v48  ;;  %v1190_v35 = vld [vmem:[#allocation16 + $0x100] sm:$0xff]  ;;  %v2333_v55 = vpack.c.bf16 %v1211_v53, %v1207_v52  ;;  %v1439_v34 = vld [vmem:[#allocation19 + $0x8] sm:$0xff] }
 0x4fb   : > { %v1202_v48 = vld [vmem:[#allocation16 + $0x160] sm:$0xff]  ;;  %v1459_v52 = vld [vmem:[#allocation19 + $0xa8] sm:$0xff] }
 0x4fc   : > { %1121 = vadd.xlane.f32.xlu1 %v1116_v36  ;;  %2314 = vmatprep.subr.bf16.mxu0 %v2313_v3  ;;  %v2331_v49 = vpack.c.bf16 %v1202_v48, %v1198_v47  ;;  %v2363_v3 = vpack.c.bf16 %v1204_v51, %v1200_v50  ;;  %v1440_v47 = vld [vmem:[#allocation19 + $0x10] sm:$0xff]  ;;  %v1441_v48 = vld [vmem:[#allocation19 + $0x18] sm:$0xff]  ;;  %v1458_v51 = vld [vmem:[#allocation19 + $0xa0] sm:$0xff] }
 0x4fd   : > { %2316 = vmatpush1.bf16.msra.mxu0 %v2315_v56  ;;  %2348 = vmatpush1.bf16.msra.mxu1 %v2347_v60  ;;  %v1213_v56 = vld [vmem:[#allocation16 + $0x1b8] sm:$0xff]  ;;  %v2335_v60 = vpack.c.bf16 %v1210_v58, %v1206_v57  ;;  %v1490_v53 = vld [vmem:[#allocation19 + $0x1a0] sm:$0xff]  ;;  %v2381_v58 = vpack.c.bf16 %v1459_v52, %v1458_v51 }
 0x4fe   : > { %2318 = vmatprep.subr.bf16.mxu0 %v2317_v61  ;;  %2350 = vmatprep.subr.bf16.mxu1 %v2349_v1  ;;  %v2365_v59 = vpack.c.bf16 %v1213_v56, %v1209_v54  ;;  %v1208_v61 = vld [vmem:[#allocation16 + $0x190] sm:$0xff]  ;;  %v1219_v1 = vld [vmem:[#allocation16 + $0x1e8] sm:$0xff]  ;;  %v1473_v50 = vld [vmem:[#allocation19 + $0x118] sm:$0xff] }
 0x4ff   : > { %v2367_v63 = vpack.c.bf16 %v1212_v62, %v1208_v61  ;;  %v2337_v6 = vpack.c.bf16 %v1219_v1, %v1215_v0  ;;  %v1491_v54 = vld [vmem:[#allocation19 + $0x1a8] sm:$0xff]  ;;  %v1442_v57 = vld [vmem:[#allocation19 + $0x20] sm:$0xff]  ;;  %v1460_v0 = vld [vmem:[#allocation19 + $0xb0] sm:$0xff] }
 0x500   : > { %v1474_v61 = vld [vmem:[#allocation19 + $0x120] sm:$0xff]  ;;  %v1475_v62 = vld [vmem:[#allocation19 + $0x128] sm:$0xff]  ;;  %v1461_v1 = vld [vmem:[#allocation19 + $0xb8] sm:$0xff] }
 0x501   : > { %2320 = vmatpush1.bf16.msra.mxu0 %v2319_v9  ;;  %2352 = vmatpush1.bf16.msra.mxu1 %v2351_v13  ;;  %v1214_v9 = vld [vmem:[#allocation16 + $0x1c0] sm:$0xff] }
 0x502   : > { %2322 = vmatprep.subr.bf16.mxu0 %v2321_v21  ;;  %2354 = vmatprep.subr.bf16.mxu1 %v2353_v25  ;;  %v1218_v13 = vld [vmem:[#allocation16 + $0x1e0] sm:$0xff]  ;;  %v1487_v21 = vld [vmem:[#allocation19 + $0x188] sm:$0xff] }
 0x503   : > { %v2405_v22 = vpack.c.bf16 %v1487_v21, %v1486_v8  ;;  %v1494_v8 = vld [vmem:[#allocation19 + $0x1c0] sm:$0xff]  ;;  %v1495_v21 = vld [vmem:[#allocation19 + $0x1c8] sm:$0xff]  ;;  %v1469_v52 = vld [vmem:[#allocation19 + $0xf8] sm:$0xff] }
 0x505   : > { %2324 = vmatpush1.bf16.msra.mxu0 %v2323_v26  ;;  %2356 = vmatpush1.bf16.msra.mxu1 %v2355_v29 }
 0x506   : > { %2358 = vmatprep.subr.bf16.mxu1 %v2357_v37  ;;  %v1456_v37 = vld [vmem:[#allocation19 + $0x90] sm:$0xff] }
 0x509   : > { %2360 = vmatpush1.bf16.msra.mxu1 %v2359_v41  ;;  %v1489_v41 = vld [vmem:[#allocation19 + $0x198] sm:$0xff] }
 0x50a   : > { %2362 = vmatprep.subr.bf16.mxu1 %v2361_v11  ;;  %v2409_v11 = vpack.c.bf16 %v1489_v41, %v1488_v40  ;;  %v1466_v41 = vld [vmem:[#allocation19 + $0xe0] sm:$0xff] }
 0x50d   : > { %2364 = vmatpush1.bf16.msra.mxu1 %v2363_v3 }
 0x50e   : > { %2366 = vmatprep.subr.bf16.mxu1 %v2365_v59  ;;  %v2413_v59 = vpack.c.bf16 %v1491_v54, %v1490_v53  ;;  %v1500_v53 = vld [vmem:[#allocation19 + $0x1f0] sm:$0xff] }
 0x511   : > { %2368 = vmatpush1.bf16.msra.mxu1 %v2367_v63  ;;  %v2415_v63 = vpack.c.bf16 %v1475_v62, %v1474_v61  ;;  %v1485_v61 = vld [vmem:[#allocation19 + $0x178] sm:$0xff] }
 0x585   : > { %v1120_v14 = vpop.xlane.xlu1 %1119 }
 0x586   : > { %v1124_v15 = vmul.f32 0.0078125, %v1120_v14  ;;  %v2369_v14 = vpack.c.bf16 %v1221_v7, %v1217_v4  ;;  %v1492_v4 = vld [vmem:[#allocation19 + $0x1b0] sm:$0xff]  ;;  %v1493_v7 = vld [vmem:[#allocation19 + $0x1b8] sm:$0xff] }
 0x588   : > { %v3706_v16 = vsub.f32 %v1115_v33, %v1124_v15  ;;  %v2325_v33 = vpack.c.bf16 %v1195_v31, %v1191_v30  ;;  %v2339_v15 = vpack.c.bf16 %v1218_v13, %v1214_v9  ;;  %2370 = vmatprep.subr.bf16.mxu1 %v2369_v14  ;;  %v1966_v30 = vld [vmem:[#allocation13] ss:$0 sm:$0xff]  ;;  %v1444_v9 = vld [vmem:[#allocation19 + $0x30] sm:$0xff]  ;;  %v2417_v14 = vpack.c.bf16 %v1493_v7, %v1492_v4  ;;  %v1222_v4 = vld [vmem:[#allocation17] sm:$0xf] }
 0x589   : > { %v1122_v17 = vpop.xlane.xlu1 %1121  ;;  %v1445_v13 = vld [vmem:[#allocation19 + $0x38] sm:$0xff] }
 0x58a   : > { %v1125_v18 = vmul.f32 0.0078125, %v1122_v17  ;;  %v1128_v2 = vmul.f32 %v3706_v16, %v3706_v16  ;;  %2326 = vmatprep.subr.bf16.mxu0 %v2325_v33  ;;  %v1216_v17 = vld [vmem:[#allocation16 + $0x1d0] sm:$0xff]  ;;  %v1438_v33 = vld [vmem:[#allocation19] sm:$0xff] }
 0x58c   : > { %v3710_v19 = vsub.f32 %v1116_v36, %v1125_v18  ;;  %1130 = vadd.xlane.f32.xlu0 %v1128_v2  ;;  %v1194_v36 = vld [vmem:[#allocation16 + $0x120] sm:$0xff]  ;;  %v1220_v18 = vld [vmem:[#allocation16 + $0x1f0] sm:$0xff] }
 0x58d   : > { %v2327_v38 = vpack.c.bf16 %v1194_v36, %v1190_v35  ;;  %v2371_v2 = vpack.c.bf16 %v1220_v18, %v1216_v17  ;;  %v1470_v35 = vld [vmem:[#allocation19 + $0x100] sm:$0xff]  ;;  %v1471_v36 = vld [vmem:[#allocation19 + $0x108] sm:$0xff]  ;;  %v1476_v17 = vld [vmem:[#allocation19 + $0x130] sm:$0xff] }
 0x58e   : > { %v1129_v5 = vmul.f32 %v3710_v19, %v3710_v19  ;;  %v2407_v46 = vpack.c.bf16 %v1471_v36, %v1470_v35  ;;  %v1477_v18 = vld [vmem:[#allocation19 + $0x138] sm:$0xff] }
 0x58f   : > { %2328 = vmatpush1.bf16.msra.mxu0 %v2327_v38  ;;  %2372 = vmatpush1.bf16.msra.mxu1 %v2371_v2  ;;  %v2419_v2 = vpack.c.bf16 %v1477_v18, %v1476_v17  ;;  %v1449_v35 = vld [vmem:[#allocation19 + $0x58] sm:$0xff] }
 0x590   : > { %1132 = vadd.xlane.f32.xlu1 %v1129_v5  ;;  %2330 = vmatprep.subr.bf16.mxu0 %v2329_v45  ;;  %v1454_v5 = vld [vmem:[#allocation19 + $0x80] sm:$0xff]  ;;  %v2375_v45 = vpack.c.bf16 %v1439_v34, %v1438_v33  ;;  %v1497_v33 = vld [vmem:[#allocation19 + $0x1d8] sm:$0xff]  ;;  %v1448_v34 = vld [vmem:[#allocation19 + $0x50] sm:$0xff] }
 0x591   : > { %v2373_v12 = vpack.c.bf16 %v1455_v20, %v1454_v5  ;;  %2406 = vmatprep.subr.bf16.mxu1 %v2405_v22  ;;  %v1462_v5 = vld [vmem:[#allocation19 + $0xc0] sm:$0xff]  ;;  %v1463_v20 = vld [vmem:[#allocation19 + $0xc8] sm:$0xff] }
 0x592   : > { %v1446_v22 = vld [vmem:[#allocation19 + $0x40] sm:$0xff] }
 0x593   : > { %2332 = vmatpush1.bf16.msra.mxu0 %v2331_v49  ;;  %v1472_v49 = vld [vmem:[#allocation19 + $0x110] sm:$0xff] }
 0x594   : > { %2334 = vmatprep.subr.bf16.mxu0 %v2333_v55  ;;  %v2379_v55 = vpack.c.bf16 %v1441_v48, %v1440_v47  ;;  %v2411_v56 = vpack.c.bf16 %v1473_v50, %v1472_v49  ;;  %v1450_v47 = vld [vmem:[#allocation19 + $0x60] sm:$0xff]  ;;  %v1451_v48 = vld [vmem:[#allocation19 + $0x68] sm:$0xff] }
 0x595   : > { %v1482_v49 = vld [vmem:[#allocation19 + $0x160] sm:$0xff]  ;;  %v1483_v50 = vld [vmem:[#allocation19 + $0x168] sm:$0xff] }
 0x596   : > { %v2431_v51 = vpack.c.bf16 %v1483_v50, %v1482_v49 }
 0x597   : > { %2336 = vmatpush1.bf16.msra.mxu0 %v2335_v60  ;;  %v1443_v60 = vld [vmem:[#allocation19 + $0x28] sm:$0xff] }
 0x598   : > { %2338 = vmatprep.subr.bf16.mxu0 %v2337_v6  ;;  %v2385_v6 = vpack.c.bf16 %v1461_v1, %v1460_v0 }
 0x59b   : > { %2340 = vmatpush1.bf16.msra.mxu0 %v2339_v15  ;;  %v2387_v15 = vpack.c.bf16 %v1445_v13, %v1444_v9 }
 0x59c   : > { %2374 = vmatprep.subr.bf16.mxu0 %v2373_v12  ;;  %v2389_v12 = vpack.c.bf16 %v1463_v20, %v1462_v5 }
 0x619   : > { %v1131_v23 = vpop.xlane.xlu0 %1130 }
 0x61a   : > { %v1134_v24 = vmul.f32 0.0078125, %v1131_v23  ;;  %v1447_v23 = vld [vmem:[#allocation19 + $0x48] sm:$0xff] }
 0x61c   : > { %v1136_v25 = vadd.f32 1e-05, %v1134_v24  ;;  %v2421_v24 = vpack.c.bf16 %v1495_v21, %v1494_v8 }
 0x61d   : > { %v1133_v26 = vpop.xlane.xlu1 %1132 }
 0x61e   : > { %2633 = vrsqrt.f32 %v1136_v25  ;;  %v1135_v27 = vmul.f32 0.0078125, %v1133_v26  ;;  %v2391_v25 = vpack.c.bf16 %v1447_v23, %v1446_v22  ;;  %v1478_v26 = vld [vmem:[#allocation19 + $0x140] sm:$0xff] }
 0x620   : > { %v1137_v28 = vadd.f32 1e-05, %v1135_v27  ;;  %v1479_v27 = vld [vmem:[#allocation19 + $0x148] sm:$0xff] }
 0x622   : > { %2635 = vrsqrt.f32 %v1137_v28  ;;  %v2423_v28 = vpack.c.bf16 %v1479_v27, %v1478_v26 }
 0x628   : > { %v2634_v29 = vpop.eup %2633 }
 0x629   : > { %v1140_v31 = vmul.f32 %v2634_v29, %v3706_v16  ;;  %v2377_v16 = vpack.c.bf16 %v1457_v39, %v1456_v37  ;;  %v1464_v29 = vld [vmem:[#allocation19 + $0xd0] sm:$0xff]  ;;  %v2395_v37 = vpack.c.bf16 %v1449_v35, %v1448_v34  ;;  %v1481_v39 = vld [vmem:[#allocation19 + $0x158] sm:$0xff] }
 0x62b   : > { %v1148_v38 = vmul.f32 %v1966_v30, %v1140_v31  ;;  %v1496_v31 = vld [vmem:[#allocation19 + $0x1d0] sm:$0xff] }
 0x62c   : > { %v2636_v42 = vpop.eup %2635  ;;  %v2425_v36 = vpack.c.bf16 %v1497_v33, %v1496_v31 }
 0x62d   : > { %v3715_v43 = vadd.f32 %v1967_v32, %v1148_v38  ;;  %v1141_v44 = vmul.f32 %v2636_v42, %v3710_v19  ;;  %v1480_v38 = vld [vmem:[#allocation19 + $0x150] sm:$0xff]  ;;  %v1467_v42 = vld [vmem:[#allocation19 + $0xe8] sm:$0xff] }
 0x62e   : > { %v2427_v40 = vpack.c.bf16 %v1481_v39, %v1480_v38 }
 0x62f   : > { %1309 = vmatmul.mubr.f32.vlgmr.msra.gmra.mrb[6].mxu0 %v3715_v43  ;;  %1386 = vmatmul.mubr.f32.vlgmr.msra.gmra.mrb[8].mxu1 %v3715_v43  ;;  %v1149_v3 = vmul.f32 %v1966_v30, %v1141_v44  ;;  %v1465_v30 = vld [vmem:[#allocation19 + $0xd8] sm:$0xff]  ;;  %v1498_v44 = vld [vmem:[#allocation19 + $0x1e0] sm:$0xff] }
 0x630   : > { %1314 = vmatprep.mubr.f32.mxu0 %v3167_v10  ;;  %1391 = vmatprep.mubr.f32.mxu1 %v3167_v10  ;;  %v2383_v10 = vpack.c.bf16 %v1443_v60, %v1442_v57  ;;  %v1453_v57 = vld [vmem:[#allocation19 + $0x78] sm:$0xff]  ;;  %v1484_v60 = vld [vmem:[#allocation19 + $0x170] sm:$0xff] }
 0x631   : > { %v3722_v19 = vadd.f32 %v1967_v32, %v1149_v3  ;;  %2376 = vmatpush3.bf16.msra.mxu0 %v2375_v45  ;;  %2408 = vmatpush3.bf16.msra.mxu1 %v2407_v46  ;;  %v2393_v32 = vpack.c.bf16 %v1465_v30, %v1464_v29  ;;  %v2397_v45 = vpack.c.bf16 %v1467_v42, %v1466_v41  ;;  %v1499_v46 = vld [vmem:[#allocation19 + $0x1e8] sm:$0xff]  ;;  %v1468_v3 = vld [vmem:[#allocation19 + $0xf0] sm:$0xff] }
 0x632   : > { %2378 = vmatprep.subr.bf16.mxu0 %v2377_v16  ;;  %2410 = vmatprep.subr.bf16.mxu1 %v2409_v11  ;;  %v2429_v16 = vpack.c.bf16 %v1499_v46, %v1498_v44  ;;  %v2399_v11 = vpack.c.bf16 %v1451_v48, %v1450_v47  ;;  %v2401_v54 = vpack.c.bf16 %v1469_v52, %v1468_v3 }
 0x633   : > { %1315 = vmatmul.mubr.f32.gmra.mrb[8].mxu0 %v3722_v19  ;;  %1392 = vmatmul.mubr.f32.gmra.mrb[10].mxu1 %v3722_v19  ;;  %v2435_v62 = vpack.c.bf16 %v1485_v61, %v1484_v60 }
 0x635   : > { %2380 = vmatpush3.bf16.msra.mxu0 %v2379_v55  ;;  %2412 = vmatpush3.bf16.msra.mxu1 %v2411_v56  ;;  %v1501_v55 = vld [vmem:[#allocation19 + $0x1f8] sm:$0xff]  ;;  %v1452_v56 = vld [vmem:[#allocation19 + $0x70] sm:$0xff] }
 0x636   : > { %2382 = vmatprep.subr.bf16.mxu0 %v2381_v58  ;;  %2414 = vmatprep.subr.bf16.mxu1 %v2413_v59  ;;  %v2433_v58 = vpack.c.bf16 %v1501_v55, %v1500_v53  ;;  %v2403_v59 = vpack.c.bf16 %v1453_v57, %v1452_v56 }
 0x639   : > { %2384 = vmatpush3.bf16.msra.mxu0 %v2383_v10  ;;  %2416 = vmatpush3.bf16.msra.mxu1 %v2415_v63  ;;  %v1224_v10 = vlaneseq }
 0x63a   : > { %2386 = vmatprep.subr.bf16.mxu0 %v2385_v6  ;;  %2418 = vmatprep.subr.bf16.mxu1 %v2417_v14 }
 0x63b   : > { %v1225_v63 = vshrl.u32 %v1224_v10, 7 }
 0x63d   : > { %2388 = vmatpush3.bf16.msra.mxu0 %v2387_v15  ;;  %2420 = vmatpush3.bf16.msra.mxu1 %v2419_v2  ;;  %v1226_v0 = vsub.s32 0, %v1225_v63  ;;  %v1234_v1 = vsub.s32 2, %v1225_v63  ;;  %v1230_v6 = vsub.s32 1, %v1225_v63  ;;  %v1238_v7 = vsub.s32 3, %v1225_v63 }
 0x63e   : > { %2390 = vmatprep.subr.bf16.mxu0 %v2389_v12  ;;  %2422 = vmatprep.subr.bf16.mxu1 %v2421_v24 }
 0x63f   : > { %v1227_v9 = vrot.slane %v1222_v4, %v1226_v0  ;;  %v1235_v13 = vrot.slane %v1222_v4, %v1234_v1  ;;  %v1231_v14 = vrot.slane %v1222_v4, %v1230_v6  ;;  %v1239_v15 = vrot.slane %v1222_v4, %v1238_v7 }
 0x641   : > { %2392 = vmatpush3.bf16.msra.mxu0 %v2391_v25  ;;  %2424 = vmatpush3.bf16.msra.mxu1 %v2423_v28 }
 0x642   : > { %2394 = vmatprep.subr.bf16.mxu0 %v2393_v32  ;;  %2426 = vmatprep.subr.bf16.mxu1 %v2425_v36 }
 0x645   : > { %2396 = vmatpush3.bf16.msra.mxu0 %v2395_v37  ;;  %2428 = vmatpush3.bf16.msra.mxu1 %v2427_v40 }
 0x646   : > { %2398 = vmatprep.subr.bf16.mxu0 %v2397_v45  ;;  %2430 = vmatprep.subr.bf16.mxu1 %v2429_v16 }
 0x649   : > { %2400 = vmatpush3.bf16.msra.mxu0 %v2399_v11  ;;  %2432 = vmatpush3.bf16.msra.mxu1 %v2431_v51 }
 0x64a   : > { %2402 = vmatprep.subr.bf16.mxu0 %v2401_v54  ;;  %2434 = vmatprep.subr.bf16.mxu1 %v2433_v58 }
 0x64d   : > { %2404 = vmatpush3.bf16.msra.mxu0 %v2403_v59  ;;  %2436 = vmatpush3.bf16.msra.mxu1 %v2435_v62 }
 0x702   : > { %v1310_v17 = vpop.f32.mrb[6].mxu0  ;;  %v1387_v18 = vpop.f32.mrb[8].mxu1 }
 0x703   : > { %v1311_v2 = vadd.f32 %v1310_v17, %v1227_v9  ;;  %v1388_v5 = vadd.f32 %v1387_v18, %v1235_v13  ;;  %v1312_v20 = vpop.f32.mrb[7].mxu0  ;;  %v1389_v8 = vpop.f32.mrb[9].mxu1 }
 0x704   : > { %v1313_v12 = vadd.f32 %v1312_v20, %v1231_v14  ;;  %v1390_v21 = vadd.f32 %v1389_v8, %v1239_v15 }
 0x705   : > { %v1406_v22 = vmul.f32 0.70710677, %v1311_v2  ;;  %v1408_v23 = vmul.f32 0.70710677, %v1388_v5  ;;  %v1398_v47 = vmul.f32 0.5, %v1311_v2  ;;  %v1400_v49 = vmul.f32 0.5, %v1388_v5 }
 0x706   : > { %v1407_v24 = vmul.f32 0.70710677, %v1313_v12  ;;  %v1409_v25 = vmul.f32 0.70710677, %v1390_v21  ;;  %v1316_v26 = vpop.f32.mrb[8].mxu0  ;;  %v1393_v27 = vpop.f32.mrb[10].mxu1 }
 0x707   : > { %2637 = verf.f32 %v1406_v22  ;;  %v1317_v28 = vadd.f32 %v1316_v26, %v1227_v9  ;;  %v1394_v29 = vadd.f32 %v1393_v27, %v1235_v13  ;;  %v1318_v30 = vpop.f32.mrb[9].mxu0  ;;  %v1395_v31 = vpop.f32.mrb[11].mxu1  ;;  %v1399_v45 = vmul.f32 0.5, %v1313_v12  ;;  %v1968_v9 = vld [vmem:[#allocation20] ss:$0 sm:$0xff] }
 0x708   : > { %2639 = verf.f32 %v1408_v23  ;;  %v1319_v32 = vadd.f32 %v1318_v30, %v1231_v14  ;;  %v1396_v33 = vadd.f32 %v1395_v31, %v1239_v15  ;;  %v1401_v48 = vmul.f32 0.5, %v1390_v21 }
 0x709   : > { %2641 = verf.f32 %v1407_v24  ;;  %v1410_v34 = vmul.f32 0.70710677, %v1317_v28  ;;  %v1412_v35 = vmul.f32 0.70710677, %v1394_v29  ;;  %v1402_v60 = vmul.f32 0.5, %v1317_v28 }
 0x70a   : > { %2643 = verf.f32 %v1409_v25  ;;  %v1411_v36 = vmul.f32 0.70710677, %v1319_v32  ;;  %v1413_v37 = vmul.f32 0.70710677, %v1396_v33  ;;  %v1403_v58 = vmul.f32 0.5, %v1319_v32 }
 0x70b   : > { %2645 = verf.f32 %v1410_v34  ;;  %v1405_v61 = vmul.f32 0.5, %v1396_v33  ;;  %v1404_v10 = vmul.f32 0.5, %v1394_v29 }
 0x70c   : > { %2647 = verf.f32 %v1412_v35 }
 0x70d   : > { %2649 = verf.f32 %v1411_v36 }
 0x70e   : > { %2651 = verf.f32 %v1413_v37 }
 0x711   : > { %v2638_v38 = vpop.eup %2637 }
 0x712   : > { %v2640_v39 = vpop.eup %2639  ;;  %v1422_v41 = vadd.f32 1.0, %v2638_v38 }
 0x713   : > { %v2642_v40 = vpop.eup %2641  ;;  %v1424_v44 = vadd.f32 1.0, %v2640_v39 }
 0x714   : > { %v2644_v42 = vpop.eup %2643  ;;  %v1423_v46 = vadd.f32 1.0, %v2642_v40  ;;  %v1430_v3 = vmul.f32 %v1422_v41, %v1398_v47  ;;  %v1969_v40 = vld [vmem:[#allocation22] ss:$0 sm:$0xff] }
 0x715   : > { %v1425_v16 = vadd.f32 1.0, %v2644_v42  ;;  %v2646_v11 = vpop.eup %2645  ;;  %v1432_v54 = vmul.f32 %v1424_v44, %v1400_v49  ;;  %v1970_v42 = vld [vmem:[#allocation23] ss:$0 sm:$0xff] }
 0x716   : > { %v1431_v50 = vmul.f32 %v1423_v46, %v1399_v45  ;;  %v2648_v51 = vpop.eup %2647  ;;  %v1426_v55 = vadd.f32 1.0, %v2646_v11 }
 0x717   : > { %v1433_v52 = vmul.f32 %v1425_v16, %v1401_v48  ;;  %v2650_v53 = vpop.eup %2649  ;;  %v1428_v57 = vadd.f32 1.0, %v2648_v51 }
 0x718   : > { %1573 = vmatprep.mubr.f32.mxu0 %v1431_v50  ;;  %v2652_v56 = vpop.eup %2651  ;;  %v1427_v59 = vadd.f32 1.0, %v2650_v53  ;;  %v1434_v1 = vmul.f32 %v1426_v55, %v1402_v60 }
 0x719   : > { %1648 = vmatprep.mubr.f32.mxu1 %v1433_v52  ;;  %1574 = vmatmul.mubr.f32.vlgmr.msra.gmra.mrb[10].mxu0 %v1430_v3  ;;  %v1429_v62 = vadd.f32 1.0, %v2652_v56  ;;  %v1436_v4 = vmul.f32 %v1428_v57, %v1404_v10 }
 0x71a   : > { %1649 = vmatmul.mubr.f32.vlgmr.msra.gmra.mrb[12].mxu1 %v1432_v54  ;;  %v1435_v63 = vmul.f32 %v1427_v59, %v1403_v58 }
 0x71b   : > { %v1437_v0 = vmul.f32 %v1429_v62, %v1405_v61 }
 0x71c   : > { %1578 = vmatprep.mubr.f32.mxu0 %v1435_v63 }
 0x71d   : > { %1653 = vmatprep.mubr.f32.mxu1 %v1437_v0  ;;  %1579 = vmatmul.mubr.f32.gmra.mrb[12].mxu0 %v1434_v1 }
 0x71e   : > { %1654 = vmatmul.mubr.f32.gmra.mrb[14].mxu1 %v1436_v4 }
 0x7ec   : > { %v2102_v6 = vpop.f32.mrb[10].mxu0 }
 0x7ed   : > { %v2140_v7 = vpop.f32.mrb[12].mxu1  ;;  %v2103_v13 = vpop.f32.mrb[11].mxu0 }
 0x7ee   : > { %v2104_v14 = vadd.f32 %v2103_v13, %v2102_v6  ;;  %v2141_v15 = vpop.f32.mrb[13].mxu1 }
 0x7ef   : > { %v2142_v17 = vadd.f32 %v2141_v15, %v2140_v7 }
 0x7f0   : > { %v1576_v18 = vadd.f32 %v2104_v14, %v1968_v9  ;;  %v2105_v2 = vpop.f32.mrb[12].mxu0 }
 0x7f1   : > { %v2143_v20 = vpop.f32.mrb[14].mxu1  ;;  %v2106_v8 = vpop.f32.mrb[13].mxu0 }
 0x7f2   : > { %v1651_v5 = vadd.f32 %v2142_v17, %v1576_v18  ;;  %v2107_v12 = vadd.f32 %v2106_v8, %v2105_v2  ;;  %v2144_v21 = vpop.f32.mrb[15].mxu1 }
 0x7f3   : > { %v2145_v22 = vadd.f32 %v2144_v21, %v2143_v20 }
 0x7f4   : > { %v1659_v23 = vadd.f32 %v1651_v5, %v3715_v43  ;;  %v1581_v24 = vadd.f32 %v2107_v12, %v1968_v9 }
 0x7f6   : > { %1663 = vadd.xlane.f32.xlu0 %v1659_v23  ;;  %v1656_v25 = vadd.f32 %v2145_v22, %v1581_v24 }
 0x7f8   : > { %v1660_v26 = vadd.f32 %v1656_v25, %v3722_v19 }
 0x7fa   : > { %1665 = vadd.xlane.f32.xlu1 %v1660_v26 }
 0x883   : > { %v1664_v27 = vpop.xlane.xlu0 %1663 }
 0x884   : > { %v1667_v28 = vmul.f32 0.0078125, %v1664_v27 }
 0x886   : > { %v1669_v29 = vsub.f32 %v1659_v23, %v1667_v28 }
 0x887   : > { %v1666_v30 = vpop.xlane.xlu1 %1665 }
 0x888   : > { %v1671_v31 = vmul.f32 %v1669_v29, %v1669_v29  ;;  %v1668_v32 = vmul.f32 0.0078125, %v1666_v30 }
 0x88a   : > { %1673 = vadd.xlane.f32.xlu0 %v1671_v31  ;;  %v1670_v33 = vsub.f32 %v1660_v26, %v1668_v32 }
 0x88c   : > { %v1672_v34 = vmul.f32 %v1670_v33, %v1670_v33 }
 0x88e   : > { %1675 = vadd.xlane.f32.xlu1 %v1672_v34 }
 0x917   : > { %v1674_v35 = vpop.xlane.xlu0 %1673 }
 0x918   : > { %v1677_v36 = vmul.f32 0.0078125, %v1674_v35 }
 0x91a   : > { %v1679_v37 = vadd.f32 1e-05, %v1677_v36 }
 0x91b   : > { %v1676_v43 = vpop.xlane.xlu1 %1675 }
 0x91c   : > { %2653 = vrsqrt.f32 %v1679_v37  ;;  %v1678_v38 = vmul.f32 0.0078125, %v1676_v43 }
 0x91e   : > { %v1680_v39 = vadd.f32 1e-05, %v1678_v38 }
 0x920   : > { %2655 = vrsqrt.f32 %v1680_v39 }
 0x926   : > { %v2654_v19 = vpop.eup %2653 }
 0x927   : > { %v1683_v41 = vmul.f32 %v2654_v19, %v1669_v29 }
 0x929   : > { %v1691_v44 = vmul.f32 %v1969_v40, %v1683_v41 }
 0x92a   : > { %v2656_v45 = vpop.eup %2655 }
 0x92b   : > { %v1699_v46 = vadd.f32 %v1970_v42, %v1691_v44  ;;  %v1684_v47 = vmul.f32 %v2656_v45, %v1670_v33 }
 0x92d   : > { %v1701_v48 = vrot.slane %v1699_v46, 4  ;;  %v1692_v16 = vmul.f32 %v1969_v40, %v1684_v47 }
 0x92f   : > { %v1702_v11 = vadd.f32 %v1701_v48, %v1699_v46  ;;  %v1700_v49 = vadd.f32 %v1970_v42, %v1692_v16 }
 0x931   : > { %v1703_v50 = vrot.slane %v1702_v11, 2  ;;  %v1707_v51 = vrot.slane %v1700_v49, 4 }
 0x933   : > { %v1704_v3 = vadd.f32 %v1703_v50, %v1702_v11  ;;  %v1708_v52 = vadd.f32 %v1707_v51, %v1700_v49 }
 0x935   : > { %v1705_v53 = vrot.slane %v1704_v3, 1  ;;  %v1709_v54 = vrot.slane %v1708_v52, 2 }
 0x937   : > { %v1710_v55 = vadd.f32 %v1709_v54, %v1708_v52  ;;  %v1706_v56 = vadd.f32 %v1705_v53, %v1704_v3 }
 0x939   : > { %v1711_v57 = vrot.slane %v1710_v55, 1  ;;  %v1714_v59 = vmul.f32 0.125, %v1706_v56 }
 0x93b   : > { %v1712_v58 = vadd.f32 %v1711_v57, %v1710_v55 }
 0x93d   : > { %v1715_v60 = vmul.f32 0.125, %v1712_v58 }
 0x93f   : > { %v1719_v61 = vsel %vm1718_vm0, %v1715_v60, %v1714_v59 }
 0x940   : > { %1721 = vst [vmem:[%s660_s20] sm:$0x3] %v1719_v61 }
 0x941   : > { %3064 = shalt.err (!%p3061_p7)
}
 0x942   : > { %s3065_s27 = scalar_lea.hbm %s3733_s3, 32  ;;  %s3069_s20 = scalar_lea.hbm %s3850_s1, 64 }
 0x943   : > { %p3066_p10 = scmp.ne.s32.totalorder %s3733_s3, %s3065_s27  ;;  %p3070_p12 = scmp.lt.u32.totalorder %s3733_s3, %s3850_s1 }
 0x944   : > { %p3071_p13 = scmp.lt.u32.totalorder %s3069_s20, %s3065_s27  ;;  %p3073_p6 = scmp.lt.u32.totalorder %s3065_s27, %s3733_s3 }
 0x945   : > { %p3067_p1 = pnand %p3066_p10, %p3851_p9 }
 0x946   : > { %p3072_p8 = por %p3071_p13, %p3070_p12 }
 0x947   : > { %p3068_p11 = pneg %p3067_p1 }
 0x948   : > { %p3074_p4 = por %p3073_p6, %p3072_p8 }
 0x94a   : > { %p3075_p3 = pnand %p3074_p4, %p3068_p11 }
 0x94c   : > { %3078 = shalt.err (!%p3075_p3)
}
 0x94d   : > { %2491 = dma.vmem_to_hbm [thread:$0]  (%p3851_p9), %s3735_s29, 32, %s3733_s3, %s1723_s17  }
 0x94e PF: > { %s3852_s26 = sld [smem:[#allocation35_spill]]  ;;  %p3853_p0 = scmp.ne.s32.totalorder %s3829_s19, 0 }
 0x94f   : > { %p3854_p5 = scmp.ge.s32.totalorder %s3145_s16, 2 }
 0x951   : > { %p2538_p2 = pnand %p3854_p5, %p3853_p0 }
 0x954   : > { %s1748_s14 = sand.u32 1, %s3852_s26  }
 0x955   : > { %s1749_s24 = scalar_lea.sflag [#allocation4], %s1748_s14 }
 0x956   : > { %3128 = dma.done.wait (!%p2538_p2), %s1749_s24, 32  }
 0x957   : > { %3130 = vsyncadd (!%p2538_p2), %s1749_s24, 4294967264  ;;  %s3855_s29 = sld [smem:[#allocation36_spill]]  ;;  %p34_p7 = scmp.ge.s32.totalorder %s3562_s23, 4  }
 0x958   : > { %s3856_s30 = smov %s3141_s15  ;;  %s3857_s15 = smov %s3574_s18 }
 0x959   : > { %s3858_s16 = smov %s3562_s23  ;;  %36 = sbr.rel (!%p34_p7) target bundleno = 18 (0x12), region = 173 }
 0x960   :  { %1754 = vsyncpa [#allocation3], 1 }
 0x961   :  { %1756 = vsyncpa [#allocation3 + $0x1], 1 }
 0x962   :  { %1757 = vsyncpa [#allocation6], 1 }
 0x963   :  { %1758 = vsyncpa [#allocation9], 1 }
 0x964   :  { %1759 = vsyncpa [#allocation12], 1 }
 0x965   :  { %1760 = vsyncpa [#allocation15], 1 }
 0x966   :  { %1761 = vsyncpa [#allocation18], 1 }
 0x967   :  { %1762 = vsyncpa [#allocation21], 1 }
 0x968   :  { %1763 = vsyncpa [#allocation24], 1 }
 0x969   :  { %1764 = vsyncpa [#allocation4], 1 }
 0x96a   :  { %1766 = vsyncpa [#allocation4 + $0x1], 1 }

</bundles_post_ra>
